<compile_context>
chip_gen: v6e
topology: v6e:2x2x1
jax: 0.10.0
libtpu: 0.0.40
codegen_flags: <defaults>
</compile_context>

<pallas_src>
import functools
import math

import jax
import jax.numpy as jnp
from jax import lax
from jax.experimental import pallas as pl
from jax.experimental.pallas import tpu as pltpu

_LN2 = math.log(2.0)
_VMEM_LIMIT = 48 * 1024 * 1024      # below v7x's 64 MiB physical VMEM, fine on v5e/v6e
_TILE_BUDGET = 24 * 1024 * 1024     # per-tile working-set budget (x2 for double-buffering)


def _choose_tile(n_items, bytes_per_item):
    """Largest leading-dim tile whose (double-buffered) working set fits the budget."""
    t = max(1, _TILE_BUDGET // max(bytes_per_item, 1) // 2)
    return int(min(t, n_items))


# ----------------------------------------------------------------------------
# Pallas kernel 1: fused backbone patchify conv + FPN inner 1x1 + FPN layer 3x3.
# Grid is tiled over images; the 1-halo feature map lives in VMEM scratch and
# the 3x3 conv is accumulated as 9 shifted matmuls (bf16 MXU, f32 accumulate).
# ----------------------------------------------------------------------------
def _backbone_fpn_kernel(x_ref, wb_ref, bb_ref, wi_ref, bi_ref, wl_ref, bl_ref,
                         o_ref, fp_ref, *, Ho, Wo):
    TN, HW, Kp = x_ref.shape
    hidden = wi_ref.shape[1]

    # backbone: strided "patchify" conv + ReLU
    x = x_ref[...].reshape(TN * HW, Kp)                                   # bf16
    feat = jnp.dot(x, wb_ref[...], preferred_element_type=jnp.float32) + bb_ref[...]
    feat = jnp.maximum(feat, 0.0)

    # FPN inner 1x1 conv
    f1 = jnp.dot(feat.astype(jnp.bfloat16), wi_ref[...],
                 preferred_element_type=jnp.float32) + bi_ref[...]

    # FPN layer 3x3 conv (pad=1): keep the feature map in a halo'd VMEM scratch
    # and accumulate 9 shifted matmuls — replaces the HBM im2col.
    fp_ref[...] = jnp.zeros(fp_ref.shape, jnp.float32)
    fp_ref[:, 1:Ho + 1, 1:Wo + 1, :] = f1.reshape(TN, Ho, Wo, hidden)

    acc = jnp.zeros((TN * HW, hidden), jnp.float32)
    for k in range(9):
        dh, dw = k // 3, k % 3
        sl = fp_ref[:, dh:dh + Ho, dw:dw + Wo, :].reshape(TN * HW, hidden)
        acc = acc + jnp.dot(sl.astype(jnp.bfloat16), wl_ref[k],
                            preferred_element_type=jnp.float32)
    o_ref[...] = (acc + bl_ref[...]).reshape(TN, HW, hidden)


def backbone_fpn(x, wb, bb, wi, bi, wl, bl, *, Ho, Wo):
    N, HW, Kp = x.shape
    assert HW == Ho * Wo
    Cmid = wb.shape[1]
    hidden = wi.shape[1]
    bytes_per_img = (HW * Kp * 2                       # bf16 input patches
                     + HW * Cmid * 4                   # backbone activation
                     + 2 * HW * hidden * 4             # f1 + output tile
                     + (Ho + 2) * (Wo + 2) * hidden * 4)   # halo scratch
    tn = _choose_tile(N, bytes_per_img)
    kern = functools.partial(_backbone_fpn_kernel, Ho=Ho, Wo=Wo)
    return pl.pallas_call(
        kern,
        grid=(pl.cdiv(N, tn),),
        in_specs=[
            pl.BlockSpec((tn, HW, Kp), lambda i: (i, 0, 0)),
            pl.BlockSpec((Kp, Cmid), lambda i: (0, 0)),            # weights stay resident
            pl.BlockSpec((1, Cmid), lambda i: (0, 0)),
            pl.BlockSpec((Cmid, hidden), lambda i: (0, 0)),
            pl.BlockSpec((1, hidden), lambda i: (0, 0)),
            pl.BlockSpec((9, hidden, hidden), lambda i: (0, 0, 0)),
            pl.BlockSpec((1, hidden), lambda i: (0, 0)),
        ],
        out_specs=pl.BlockSpec((tn, HW, hidden), lambda i: (i, 0, 0)),
        out_shape=jax.ShapeDtypeStruct((N, HW, hidden), jnp.float32),
        scratch_shapes=[pltpu.VMEM((tn, Ho + 2, Wo + 2, hidden), jnp.float32)],
        compiler_params=pltpu.CompilerParams(
            dimension_semantics=("parallel",),
            vmem_limit_bytes=_VMEM_LIMIT),
    )(x, wb, bb.reshape(1, Cmid), wi, bi.reshape(1, hidden), wl, bl.reshape(1, hidden))


# ----------------------------------------------------------------------------
# Pallas kernel 2: fused point-cloud path
#   world crop mask -> hand-frame transform (VPU FMAs) -> hand crop mask ->
#   mask features -> NeRF pos-emb -> concat [pos | feat | lang] -> PointNet MLP
#   (Linear-ReLU-Linear, bf16 MXU) -> max-pool over points.
# Grid is tiled over (b*fs); intermediates never leave VMEM.
# ----------------------------------------------------------------------------
def _geo_pointnet_kernel(pcd_ref, feat_ref, lang_ref, matT_ref, bnd_ref,
                         w1_ref, b1_ref, w2_ref, b2_ref, o_ref, *, n_freq):
    TB, n, _ = pcd_ref.shape
    hidden = feat_ref.shape[-1]
    d_out = w2_ref.shape[1]

    pcd = pcd_ref[...]                 # (TB, n, 3)
    feat = feat_ref[...]               # (TB, n, hidden)
    m = matT_ref[...]                  # (TB, 4, 4) == hand_mat_inv^T
    b = bnd_ref[...]                   # (TB, 4, 3) == [lo, hi, hand_lo, hand_hi]

    # crop_point_cloud(pcd, boundaries)  — one lane reduce per mask
    cw = ((pcd >= b[:, 0:1, :]) & (pcd <= b[:, 1:2, :])).astype(jnp.float32)
    in_crop = jnp.min(cw, axis=-1, keepdims=True)                     # (TB, n, 1)

    # batch_transform_point_cloud(pcd, hand_mat_inv) — VPU broadcast FMAs
    pcd_hand = (pcd[..., 0:1] * m[:, 0:1, 0:3]
                + pcd[..., 1:2] * m[:, 1:2, 0:3]
                + pcd[..., 2:3] * m[:, 2:3, 0:3]
                + m[:, 3:4, 0:3])                                     # (TB, n, 3)

    # crop_point_cloud(pcd_hand, hand_frame_boundaries)
    ch = ((pcd_hand >= b[:, 2:3, :]) & (pcd_hand <= b[:, 3:4, :])).astype(jnp.float32)
    in_hand = jnp.min(ch, axis=-1, keepdims=True)

    maskf = in_crop * in_hand                                         # (TB, n, 1)
    pcd_m = pcd_hand * maskf          # hand_frame=True -> keep hand-frame coords
    feat_m = feat * maskf

    # NeRF sinusoidal positional embedding; 2^j*pi are compile-time constants.
    freqs = jnp.exp(lax.broadcasted_iota(jnp.float32, (1, 1, n_freq), 2) * _LN2) * math.pi
    parts = []
    for j in range(3):
        ang = pcd_m[..., j:j + 1] * freqs                             # (TB, n, n_freq)
        parts.append(jnp.sin(ang))
        parts.append(jnp.cos(ang))
    pos = jnp.concatenate(parts, axis=-1)                             # (TB, n, 6*n_freq)

    # cat order: pos, image-feats, lang  (do_rgb=False) — built in VMEM only.
    lang_b = jnp.broadcast_to(lang_ref[...], (TB, n, hidden))
    cat = jnp.concatenate([pos, feat_m, lang_b], axis=-1)             # (TB, n, pc_in)

    # Synthetic PointNet extractor: per-point MLP + max-pool over points.
    pc_in = cat.shape[-1]
    x2 = cat.reshape(TB * n, pc_in).astype(jnp.bfloat16)
    h = jnp.dot(x2, w1_ref[...], preferred_element_type=jnp.float32) + b1_ref[...]
    h = jnp.maximum(h, 0.0)
    f = jnp.dot(h.astype(jnp.bfloat16), w2_ref[...],
                preferred_element_type=jnp.float32) + b2_ref[...]
    # downsample_mode == 'none' -> pool mask is statically all ones: plain max
    # (crop-removed points participate with zeroed features, as in the reference).
    o_ref[...] = jnp.max(f.reshape(TB, n, d_out), axis=1, keepdims=True)


def geo_pointnet(pcd, feat, lang, matT, bnds, w1, b1, w2, b2, *, n_freq):
    BF, n, _ = pcd.shape
    hidden = feat.shape[-1]
    pc_in, d_hid = w1.shape
    d_out = w2.shape[1]
    bytes_per_b = n * (3 + hidden + pc_in + 6 * n_freq + d_hid + d_out) * 4
    tb = _choose_tile(BF, bytes_per_b)
    out = pl.pallas_call(
        functools.partial(_geo_pointnet_kernel, n_freq=n_freq),
        grid=(pl.cdiv(BF, tb),),
        in_specs=[
            pl.BlockSpec((tb, n, 3), lambda i: (i, 0, 0)),
            pl.BlockSpec((tb, n, hidden), lambda i: (i, 0, 0)),
            pl.BlockSpec((tb, 1, hidden), lambda i: (i, 0, 0)),
            pl.BlockSpec((tb, 4, 4), lambda i: (i, 0, 0)),
            pl.BlockSpec((tb, 4, 3), lambda i: (i, 0, 0)),
            pl.BlockSpec((pc_in, d_hid), lambda i: (0, 0)),
            pl.BlockSpec((1, d_hid), lambda i: (0, 0)),
            pl.BlockSpec((d_hid, d_out), lambda i: (0, 0)),
            pl.BlockSpec((1, d_out), lambda i: (0, 0)),
        ],
        out_specs=pl.BlockSpec((tb, 1, d_out), lambda i: (i, 0, 0)),
        out_shape=jax.ShapeDtypeStruct((BF, 1, d_out), jnp.float32),
        compiler_params=pltpu.CompilerParams(
            dimension_semantics=("parallel",),
            vmem_limit_bytes=_VMEM_LIMIT),
    )(pcd, feat, lang, matT, bnds, w1, b1.reshape(1, d_hid), w2, b2.reshape(1, d_out))
    return out[:, 0, :]


# ----------------------------------------------------------------------------
# Pallas kernel 3: fused 2-layer linear (task_encoder->lang_proj, lowdim MLP).
# These activations are smaller than a vreg, so one launch each, full blocks.
# ----------------------------------------------------------------------------
def _mlp2_kernel(x_ref, w1_ref, b1_ref, w2_ref, b2_ref, o_ref, *, mid_relu):
    h = jnp.dot(x_ref[...], w1_ref[...], preferred_element_type=jnp.float32) + b1_ref[...]
    if mid_relu:
        h = jnp.maximum(h, 0.0)
    o_ref[...] = jnp.dot(h, w2_ref[...], preferred_element_type=jnp.float32) + b2_ref[...]


def pallas_mlp2(x, w1, b1, w2, b2, *, mid_relu):
    M, K = x.shape
    D1 = w1.shape[1]
    D2 = w2.shape[1]
    return pl.pallas_call(
        functools.partial(_mlp2_kernel, mid_relu=mid_relu),
        grid=(1,),
        in_specs=[
            pl.BlockSpec((M, K), lambda i: (0, 0)),
            pl.BlockSpec((K, D1), lambda i: (0, 0)),
            pl.BlockSpec((1, D1), lambda i: (0, 0)),
            pl.BlockSpec((D1, D2), lambda i: (0, 0)),
            pl.BlockSpec((1, D2), lambda i: (0, 0)),
        ],
        out_specs=pl.BlockSpec((M, D2), lambda i: (0, 0)),
        out_shape=jax.ShapeDtypeStruct((M, D2), jnp.float32),
    )(x, w1, b1.reshape(1, D1), w2, b2.reshape(1, D2))


# ----------------------------------------------------------------------------
# Parameter construction (deterministic, synthetic); MXU weights stored in bf16.
# ----------------------------------------------------------------------------
def init_params(key, *, hidden_dim, lang_embed_dim, task_dim, backbone_out,
                patch, in_ch, pc_hidden, pc_out, d_lowdim, lowdim_hidden,
                lowdim_out):
    ks = jax.random.split(key, 12)

    def dense(k, fi, fo):
        kw, kb = jax.random.split(k)
        w = jax.random.normal(kw, (fi, fo), jnp.float32) / math.sqrt(fi)
        b = 0.01 * jax.random.normal(kb, (fo,), jnp.float32)
        return w, b

    p = {}
    w, b = dense(ks[0], patch * patch * in_ch, backbone_out)
    p["backbone_w"], p["backbone_b"] = w.astype(jnp.bfloat16), b
    w, b = dense(ks[1], backbone_out, hidden_dim)
    p["fpn_inner_w"], p["fpn_inner_b"] = w.astype(jnp.bfloat16), b
    w, b = dense(ks[2], 9 * hidden_dim, hidden_dim)
    p["fpn_layer_w"] = w.reshape(9, hidden_dim, hidden_dim).astype(jnp.bfloat16)
    p["fpn_layer_b"] = b
    p["task_w"], p["task_b"] = dense(ks[3], task_dim, lang_embed_dim)
    p["lang_w"], p["lang_b"] = dense(ks[4], lang_embed_dim, hidden_dim)
    pc_in = 3 * hidden_dim        # do_pos + do_image + do_lang, do_rgb=False
    w, b = dense(ks[5], pc_in, pc_hidden)
    p["pc_w1"], p["pc_b1"] = w.astype(jnp.bfloat16), b
    w, b = dense(ks[6], pc_hidden, pc_out)
    p["pc_w2"], p["pc_b2"] = w.astype(jnp.bfloat16), b
    p["low_w1"], p["low_b1"] = dense(ks[7], d_lowdim, lowdim_hidden)
    p["low_w2"], p["low_b2"] = dense(ks[8], lowdim_hidden, lowdim_out)
    # metaworld buffers
    p["boundaries"] = jnp.tile(
        jnp.array([[-1.0, -1.0, -1.0], [1.0, 1.0, 1.0]], jnp.float32)[None],
        (50, 1, 1))
    p["hand_frame_boundaries"] = jnp.array(
        [[0.0, -1.0, -1.0], [1.0, 1.0, 1.0]], jnp.float32)
    return p


# ----------------------------------------------------------------------------
# Forward pass (mirrors HybridEncoder.forward)
# ----------------------------------------------------------------------------
def hybrid_encoder_forward(params, data, *, obs_key="obs", hidden_dim=48,
                           patch=4):
    obs = data[obs_key]
    rgb_keys = ["agentview_rgb", "eye_in_hand_rgb"]
    rgb = jnp.stack([obs[k] for k in rgb_keys])                            # (ncam,B,fs,C,H,W)
    pcd = jnp.stack([obs[k[:-4] + "_pointcloud_full"] for k in rgb_keys])  # (ncam,B,fs,H,W,3)

    ncam, B, fs, C, H, W = rgb.shape
    BF = B * fs
    N = BF * ncam

    # '(b fs ncam) ...' ordering, NHWC layout.
    rgb_nhwc = jnp.transpose(rgb, (1, 2, 0, 4, 5, 3)).reshape(N, H, W, C)
    pcd_nhwc = jnp.transpose(pcd, (1, 2, 0, 3, 4, 5)).reshape(N, H, W, 3)

    # ----- backbone (normalize + patchify) + FPN, one fused Pallas kernel -----
    mean = jnp.array([0.485, 0.456, 0.406], jnp.float32)
    std = jnp.array([0.229, 0.224, 0.225], jnp.float32)
    rgb_norm = (rgb_nhwc - mean) / std
    Ho, Wo = H // patch, W // patch
    HW = Ho * Wo
    x = rgb_norm.reshape(N, Ho, patch, Wo, patch, C)
    x = jnp.transpose(x, (0, 1, 3, 2, 4, 5)).reshape(N, HW, patch * patch * C)
    x = x.astype(jnp.bfloat16)        # halves input DMA; f32 accumulate in-kernel
    rgb_features = backbone_fpn(
        x, params["backbone_w"], params["backbone_b"],
        params["fpn_inner_w"], params["fpn_inner_b"],
        params["fpn_layer_w"], params["fpn_layer_b"], Ho=Ho, Wo=Wo)        # (N, HW, hidden)

    # nearest-neighbour point-cloud downsample (matches F.interpolate 'nearest'
    # for integer ratios), regroup to (b*fs, ncam*h*w, c) point lists.
    pcd_small = pcd_nhwc[:, ::H // Ho, ::W // Wo, :]                       # (N, Ho, Wo, 3)
    pcd_pts = pcd_small.reshape(BF, ncam * HW, 3)
    feat_pts = rgb_features.reshape(BF, ncam * HW, hidden_dim)
    # TODO(synk): the reference also bilinearly resizes rgb for pc_rgb/do_rgb; with
    # do_rgb=False and the synthetic extractor ignoring pc_rgb it is dead work and
    # is intentionally dropped.

    # ----- language path: task_encoder -> lang_proj, fused in one kernel -----
    lang = pallas_mlp2(data["task_emb"], params["task_w"], params["task_b"],
                       params["lang_w"], params["lang_b"], mid_relu=False)  # (B, hidden)
    lang_bf = jnp.repeat(lang, fs, axis=0).reshape(BF, 1, hidden_dim)

    # ----- crops / hand frame / NeRF pos-emb / concat / PointNet, fused -----
    bnds = jnp.repeat(params["boundaries"][data["task_id"]], fs, axis=0)    # (BF,2,3)
    hbnds = jnp.broadcast_to(params["hand_frame_boundaries"][None], (BF, 2, 3))
    bounds_all = jnp.concatenate([bnds, hbnds], axis=1)                     # (BF,4,3)
    matT = jnp.swapaxes(obs["hand_mat_inv"].reshape(BF, 4, 4), -1, -2)
    n_freq = hidden_dim // 6
    assert 6 * n_freq == hidden_dim, "hidden_dim must be divisible by 6 (NeRF emb)"
    pc_feat = geo_pointnet(pcd_pts, feat_pts, lang_bf, matT, bounds_all,
                           params["pc_w1"], params["pc_b1"],
                           params["pc_w2"], params["pc_b2"],
                           n_freq=n_freq)                                   # (BF, d_out)
    out = pc_feat.reshape(B, fs, -1)

    # ----- lowdim encoder (fused Linear-ReLU-Linear) -----
    lowdim = jnp.concatenate([obs["ee_pos"], obs["gripper_states"]], axis=-1)
    d_low = lowdim.shape[-1]
    proprio = pallas_mlp2(lowdim.reshape(BF, d_low),
                          params["low_w1"], params["low_b1"],
                          params["low_w2"], params["low_b2"],
                          mid_relu=True).reshape(B, fs, -1)

    return ([out], [proprio])


# ----------------------------------------------------------------------------
if __name__ == "__main__":
    B, fs, C, H, W = 2, 1, 3, 16, 16
    hidden_dim = 48          # divisible by 6 for the NeRF embedding
    lang_embed_dim = 32      # != hidden_dim  -> lang_proj is a Linear
    task_dim = 10

    key = jax.random.PRNGKey(0)
    k_img, k_pcd, k_task, k_mat, k_low, k_par = jax.random.split(key, 6)

    params = init_params(
        k_par, hidden_dim=hidden_dim, lang_embed_dim=lang_embed_dim,
        task_dim=task_dim, backbone_out=256, patch=4, in_ch=C,
        pc_hidden=128, pc_out=64, d_lowdim=5, lowdim_hidden=64, lowdim_out=64)

    k1, k2, k3, k4 = jax.random.split(k_img, 4)
    kp1, kp2 = jax.random.split(k_pcd, 2)
    kl1, kl2 = jax.random.split(k_low, 2)

    def make_hand_mat_inv(B, fs):
        mats = []
        for b in range(B):
            ang = 0.2 + 0.3 * b
            c, s = math.cos(ang), math.sin(ang)
            R = jnp.array([[c, -s, 0.0], [s, c, 0.0], [0.0, 0.0, 1.0]], jnp.float32)
            t = jnp.array([0.1 * (b + 1), -0.05, 0.2], jnp.float32)
            M = jnp.concatenate(
                [jnp.concatenate([R, t[:, None]], 1),
                 jnp.array([[0.0, 0.0, 0.0, 1.0]], jnp.float32)], 0)
            mats.append(M)
        return jnp.broadcast_to(jnp.stack(mats)[:, None], (B, fs, 4, 4))

    data = {
        "obs": {
            "agentview_rgb": jax.random.uniform(k1, (B, fs, C, H, W), jnp.float32),
            "eye_in_hand_rgb": jax.random.uniform(k2, (B, fs, C, H, W), jnp.float32),
            "agentview_pointcloud_full": jax.random.uniform(
                kp1, (B, fs, H, W, 3), jnp.float32, -1.2, 1.2),
            "eye_in_hand_pointcloud_full": jax.random.uniform(
                kp2, (B, fs, H, W, 3), jnp.float32, -1.2, 1.2),
            "hand_mat_inv": make_hand_mat_inv(B, fs),
            "ee_pos": jax.random.normal(kl1, (B, fs, 3), jnp.float32),
            "gripper_states": jax.random.normal(kl2, (B, fs, 2), jnp.float32),
        },
        "task_emb": jax.random.normal(k_task, (B, task_dim), jnp.float32),
        "task_id": jnp.array([0, 1], jnp.int32),
    }

    perception_out, proprio_out = hybrid_encoder_forward(
        params, data, obs_key="obs", hidden_dim=hidden_dim, patch=4)

    jax.block_until_ready(perception_out[0])
    jax.block_until_ready(proprio_out[0])
    assert perception_out[0].shape == (B, fs, 64)
    assert proprio_out[0].shape == (B, fs, 64)
    print("KERNEL_OK")
</pallas_src>

<mosaic_0001>
module attributes {stable_mosaic.version = 11 : i64} {
  func.func @_backbone_fpn_kernel(%arg0: i32, %arg1: memref<4x16x48xbf16, #tpu.memory_space<vmem>>, %arg2: memref<48x256xbf16, #tpu.memory_space<vmem>>, %arg3: memref<1x256xf32, #tpu.memory_space<vmem>>, %arg4: memref<256x48xbf16, #tpu.memory_space<vmem>>, %arg5: memref<1x48xf32, #tpu.memory_space<vmem>>, %arg6: memref<9x48x48xbf16, #tpu.memory_space<vmem>>, %arg7: memref<1x48xf32, #tpu.memory_space<vmem>>, %arg8: memref<4x16x48xf32, #tpu.memory_space<vmem>>, %arg9: memref<4x6x6x48xf32, #tpu.memory_space<vmem>>) attributes {dimension_semantics = [#tpu.dimension_semantics<parallel>], iteration_bounds = array<i64: 1>, scalar_prefetch = 0 : i64, scratch_operands = 1 : i64, tpu.core_type = #tpu.core_type<tc>, window_params = [{transform_indices = @transform_0, window_bounds = array<i64: 4, 16, 48>}, {pipeline_mode = #tpu.pipeline_mode<synchronous>, transform_indices = @transform_1, window_bounds = array<i64: 48, 256>}, {pipeline_mode = #tpu.pipeline_mode<synchronous>, transform_indices = @transform_2, window_bounds = array<i64: 1, 256>}, {pipeline_mode = #tpu.pipeline_mode<synchronous>, transform_indices = @transform_3, window_bounds = array<i64: 256, 48>}, {pipeline_mode = #tpu.pipeline_mode<synchronous>, transform_indices = @transform_4, window_bounds = array<i64: 1, 48>}, {pipeline_mode = #tpu.pipeline_mode<synchronous>, transform_indices = @transform_5, window_bounds = array<i64: 9, 48, 48>}, {pipeline_mode = #tpu.pipeline_mode<synchronous>, transform_indices = @transform_6, window_bounds = array<i64: 1, 48>}, {transform_indices = @transform_7, window_bounds = array<i64: 4, 16, 48>}]} {
    %c0 = arith.constant 0 : index
    %c0_0 = arith.constant 0 : index
    %c0_1 = arith.constant 0 : index
    %0 = vector.load %arg1[%c0, %c0_0, %c0_1] : memref<4x16x48xbf16, #tpu.memory_space<vmem>>, vector<4x16x48xbf16>
    %1 = vector.shape_cast %0 : vector<4x16x48xbf16> to vector<64x48xbf16>
    %c0_2 = arith.constant 0 : index
    %c0_3 = arith.constant 0 : index
    %2 = vector.load %arg2[%c0_2, %c0_3] : memref<48x256xbf16, #tpu.memory_space<vmem>>, vector<48x256xbf16>
    %cst = arith.constant dense<0.000000e+00> : vector<64x256xf32>
    %3 = tpu.matmul %1, %2, %cst {dimension_numbers = #tpu.dot_dimension_numbers<[1], [0], [0], [1], [0, 0, 1, 1], [], []>} : vector<64x48xbf16>, vector<48x256xbf16>, vector<64x256xf32> -> vector<64x256xf32>
    %c0_4 = arith.constant 0 : index
    %c0_5 = arith.constant 0 : index
    %4 = vector.load %arg3[%c0_4, %c0_5] : memref<1x256xf32, #tpu.memory_space<vmem>>, vector<1x256xf32>
    %5 = vector.broadcast %4 : vector<1x256xf32> to vector<64x256xf32>
    %6 = arith.addf %3, %5 : vector<64x256xf32>
    %cst_6 = arith.constant 0.000000e+00 : f32
    %7 = vector.broadcast %cst_6 : f32 to vector<64x256xf32>
    %8 = arith.maximumf %6, %7 : vector<64x256xf32>
    %9 = arith.truncf %8 : vector<64x256xf32> to vector<64x256xbf16>
    %c0_7 = arith.constant 0 : index
    %c0_8 = arith.constant 0 : index
    %10 = vector.load %arg4[%c0_7, %c0_8] : memref<256x48xbf16, #tpu.memory_space<vmem>>, vector<256x48xbf16>
    %cst_9 = arith.constant dense<0.000000e+00> : vector<64x48xf32>
    %11 = tpu.matmul %9, %10, %cst_9 {dimension_numbers = #tpu.dot_dimension_numbers<[1], [0], [0], [1], [0, 0, 1, 1], [], []>} : vector<64x256xbf16>, vector<256x48xbf16>, vector<64x48xf32> -> vector<64x48xf32>
    %c0_10 = arith.constant 0 : index
    %c0_11 = arith.constant 0 : index
    %12 = vector.load %arg5[%c0_10, %c0_11] : memref<1x48xf32, #tpu.memory_space<vmem>>, vector<1x48xf32>
    %13 = vector.broadcast %12 : vector<1x48xf32> to vector<64x48xf32>
    %14 = arith.addf %11, %13 : vector<64x48xf32>
    %cst_12 = arith.constant 0.000000e+00 : f32
    %15 = vector.broadcast %cst_12 : f32 to vector<4x6x6x48xf32>
    %c0_13 = arith.constant 0 : index
    %c0_14 = arith.constant 0 : index
    %c0_15 = arith.constant 0 : index
    %c0_16 = arith.constant 0 : index
    %16 = vector.load %arg9[%c0_13, %c0_14, %c0_15, %c0_16] : memref<4x6x6x48xf32, #tpu.memory_space<vmem>>, vector<4x6x6x48xf32>
    tpu.vector_store %arg9[%c0_13, %c0_14, %c0_15, %c0_16], %15 {strides = array<i32>} : memref<4x6x6x48xf32, #tpu.memory_space<vmem>>, vector<4x6x6x48xf32>,
    %17 = vector.shape_cast %14 : vector<64x48xf32> to vector<4x4x4x48xf32>
    %c0_17 = arith.constant 0 : index
    %c1 = arith.constant 1 : index
    %c1_18 = arith.constant 1 : index
    %c0_19 = arith.constant 0 : index
    %18 = vector.load %arg9[%c0_17, %c1, %c1_18, %c0_19] : memref<4x6x6x48xf32, #tpu.memory_space<vmem>>, vector<4x4x4x48xf32>
    tpu.vector_store %arg9[%c0_17, %c1, %c1_18, %c0_19], %17 {strides = array<i32>} : memref<4x6x6x48xf32, #tpu.memory_space<vmem>>, vector<4x4x4x48xf32>,
    %cst_20 = arith.constant 0.000000e+00 : f32
    %19 = vector.broadcast %cst_20 : f32 to vector<64x48xf32>
    %c0_21 = arith.constant 0 : index
    %c0_22 = arith.constant 0 : index
    %c0_23 = arith.constant 0 : index
    %c0_24 = arith.constant 0 : index
    %20 = vector.load %arg9[%c0_21, %c0_22, %c0_23, %c0_24] : memref<4x6x6x48xf32, #tpu.memory_space<vmem>>, vector<4x4x4x48xf32>
    %21 = vector.shape_cast %20 : vector<4x4x4x48xf32> to vector<64x48xf32>
    %22 = arith.truncf %21 : vector<64x48xf32> to vector<64x48xbf16>
    %c0_25 = arith.constant 0 : index
    %c0_26 = arith.constant 0 : index
    %c0_27 = arith.constant 0 : index
    %23 = vector.load %arg6[%c0_25, %c0_26, %c0_27] : memref<9x48x48xbf16, #tpu.memory_space<vmem>>, vector<1x48x48xbf16>
    %24 = vector.shape_cast %23 : vector<1x48x48xbf16> to vector<48x48xbf16>
    %cst_28 = arith.constant dense<0.000000e+00> : vector<64x48xf32>
    %25 = tpu.matmul %22, %24, %cst_28 {dimension_numbers = #tpu.dot_dimension_numbers<[1], [0], [0], [1], [0, 0, 1, 1], [], []>} : vector<64x48xbf16>, vector<48x48xbf16>, vector<64x48xf32> -> vector<64x48xf32>
    %26 = arith.addf %19, %25 : vector<64x48xf32>
    %c0_29 = arith.constant 0 : index
    %c0_30 = arith.constant 0 : index
    %c1_31 = arith.constant 1 : index
    %c0_32 = arith.constant 0 : index
    %27 = vector.load %arg9[%c0_29, %c0_30, %c1_31, %c0_32] : memref<4x6x6x48xf32, #tpu.memory_space<vmem>>, vector<4x4x4x48xf32>
    %28 = vector.shape_cast %27 : vector<4x4x4x48xf32> to vector<64x48xf32>
    %29 = arith.truncf %28 : vector<64x48xf32> to vector<64x48xbf16>
    %c1_33 = arith.constant 1 : index
    %c0_34 = arith.constant 0 : index
    %c0_35 = arith.constant 0 : index
    %30 = vector.load %arg6[%c1_33, %c0_34, %c0_35] : memref<9x48x48xbf16, #tpu.memory_space<vmem>>, vector<1x48x48xbf16>
    %31 = vector.shape_cast %30 : vector<1x48x48xbf16> to vector<48x48xbf16>
    %cst_36 = arith.constant dense<0.000000e+00> : vector<64x48xf32>
    %32 = tpu.matmul %29, %31, %cst_36 {dimension_numbers = #tpu.dot_dimension_numbers<[1], [0], [0], [1], [0, 0, 1, 1], [], []>} : vector<64x48xbf16>, vector<48x48xbf16>, vector<64x48xf32> -> vector<64x48xf32>
    %33 = arith.addf %26, %32 : vector<64x48xf32>
    %c0_37 = arith.constant 0 : index
    %c0_38 = arith.constant 0 : index
    %c2 = arith.constant 2 : index
    %c0_39 = arith.constant 0 : index
    %34 = vector.load %arg9[%c0_37, %c0_38, %c2, %c0_39] : memref<4x6x6x48xf32, #tpu.memory_space<vmem>>, vector<4x4x4x48xf32>
    %35 = vector.shape_cast %34 : vector<4x4x4x48xf32> to vector<64x48xf32>
    %36 = arith.truncf %35 : vector<64x48xf32> to vector<64x48xbf16>
    %c2_40 = arith.constant 2 : index
    %c0_41 = arith.constant 0 : index
    %c0_42 = arith.constant 0 : index
    %37 = vector.load %arg6[%c2_40, %c0_41, %c0_42] : memref<9x48x48xbf16, #tpu.memory_space<vmem>>, vector<1x48x48xbf16>
    %38 = vector.shape_cast %37 : vector<1x48x48xbf16> to vector<48x48xbf16>
    %cst_43 = arith.constant dense<0.000000e+00> : vector<64x48xf32>
    %39 = tpu.matmul %36, %38, %cst_43 {dimension_numbers = #tpu.dot_dimension_numbers<[1], [0], [0], [1], [0, 0, 1, 1], [], []>} : vector<64x48xbf16>, vector<48x48xbf16>, vector<64x48xf32> -> vector<64x48xf32>
    %40 = arith.addf %33, %39 : vector<64x48xf32>
    %c0_44 = arith.constant 0 : index
    %c1_45 = arith.constant 1 : index
    %c0_46 = arith.constant 0 : index
    %c0_47 = arith.constant 0 : index
    %41 = vector.load %arg9[%c0_44, %c1_45, %c0_46, %c0_47] : memref<4x6x6x48xf32, #tpu.memory_space<vmem>>, vector<4x4x4x48xf32>
    %42 = vector.shape_cast %41 : vector<4x4x4x48xf32> to vector<64x48xf32>
    %43 = arith.truncf %42 : vector<64x48xf32> to vector<64x48xbf16>
    %c3 = arith.constant 3 : index
    %c0_48 = arith.constant 0 : index
    %c0_49 = arith.constant 0 : index
    %44 = vector.load %arg6[%c3, %c0_48, %c0_49] : memref<9x48x48xbf16, #tpu.memory_space<vmem>>, vector<1x48x48xbf16>
    %45 = vector.shape_cast %44 : vector<1x48x48xbf16> to vector<48x48xbf16>
    %cst_50 = arith.constant dense<0.000000e+00> : vector<64x48xf32>
    %46 = tpu.matmul %43, %45, %cst_50 {dimension_numbers = #tpu.dot_dimension_numbers<[1], [0], [0], [1], [0, 0, 1, 1], [], []>} : vector<64x48xbf16>, vector<48x48xbf16>, vector<64x48xf32> -> vector<64x48xf32>
    %47 = arith.addf %40, %46 : vector<64x48xf32>
    %c0_51 = arith.constant 0 : index
    %c1_52 = arith.constant 1 : index
    %c1_53 = arith.constant 1 : index
    %c0_54 = arith.constant 0 : index
    %48 = vector.load %arg9[%c0_51, %c1_52, %c1_53, %c0_54] : memref<4x6x6x48xf32, #tpu.memory_space<vmem>>, vector<4x4x4x48xf32>
    %49 = vector.shape_cast %48 : vector<4x4x4x48xf32> to vector<64x48xf32>
    %50 = arith.truncf %49 : vector<64x48xf32> to vector<64x48xbf16>
    %c4 = arith.constant 4 : index
    %c0_55 = arith.constant 0 : index
    %c0_56 = arith.constant 0 : index
    %51 = vector.load %arg6[%c4, %c0_55, %c0_56] : memref<9x48x48xbf16, #tpu.memory_space<vmem>>, vector<1x48x48xbf16>
    %52 = vector.shape_cast %51 : vector<1x48x48xbf16> to vector<48x48xbf16>
    %cst_57 = arith.constant dense<0.000000e+00> : vector<64x48xf32>
    %53 = tpu.matmul %50, %52, %cst_57 {dimension_numbers = #tpu.dot_dimension_numbers<[1], [0], [0], [1], [0, 0, 1, 1], [], []>} : vector<64x48xbf16>, vector<48x48xbf16>, vector<64x48xf32> -> vector<64x48xf32>
    %54 = arith.addf %47, %53 : vector<64x48xf32>
    %c0_58 = arith.constant 0 : index
    %c1_59 = arith.constant 1 : index
    %c2_60 = arith.constant 2 : index
    %c0_61 = arith.constant 0 : index
    %55 = vector.load %arg9[%c0_58, %c1_59, %c2_60, %c0_61] : memref<4x6x6x48xf32, #tpu.memory_space<vmem>>, vector<4x4x4x48xf32>
    %56 = vector.shape_cast %55 : vector<4x4x4x48xf32> to vector<64x48xf32>
    %57 = arith.truncf %56 : vector<64x48xf32> to vector<64x48xbf16>
    %c5 = arith.constant 5 : index
    %c0_62 = arith.constant 0 : index
    %c0_63 = arith.constant 0 : index
    %58 = vector.load %arg6[%c5, %c0_62, %c0_63] : memref<9x48x48xbf16, #tpu.memory_space<vmem>>, vector<1x48x48xbf16>
    %59 = vector.shape_cast %58 : vector<1x48x48xbf16> to vector<48x48xbf16>
    %cst_64 = arith.constant dense<0.000000e+00> : vector<64x48xf32>
    %60 = tpu.matmul %57, %59, %cst_64 {dimension_numbers = #tpu.dot_dimension_numbers<[1], [0], [0], [1], [0, 0, 1, 1], [], []>} : vector<64x48xbf16>, vector<48x48xbf16>, vector<64x48xf32> -> vector<64x48xf32>
    %61 = arith.addf %54, %60 : vector<64x48xf32>
    %c0_65 = arith.constant 0 : index
    %c2_66 = arith.constant 2 : index
    %c0_67 = arith.constant 0 : index
    %c0_68 = arith.constant 0 : index
    %62 = vector.load %arg9[%c0_65, %c2_66, %c0_67, %c0_68] : memref<4x6x6x48xf32, #tpu.memory_space<vmem>>, vector<4x4x4x48xf32>
    %63 = vector.shape_cast %62 : vector<4x4x4x48xf32> to vector<64x48xf32>
    %64 = arith.truncf %63 : vector<64x48xf32> to vector<64x48xbf16>
    %c6 = arith.constant 6 : index
    %c0_69 = arith.constant 0 : index
    %c0_70 = arith.constant 0 : index
    %65 = vector.load %arg6[%c6, %c0_69, %c0_70] : memref<9x48x48xbf16, #tpu.memory_space<vmem>>, vector<1x48x48xbf16>
    %66 = vector.shape_cast %65 : vector<1x48x48xbf16> to vector<48x48xbf16>
    %cst_71 = arith.constant dense<0.000000e+00> : vector<64x48xf32>
    %67 = tpu.matmul %64, %66, %cst_71 {dimension_numbers = #tpu.dot_dimension_numbers<[1], [0], [0], [1], [0, 0, 1, 1], [], []>} : vector<64x48xbf16>, vector<48x48xbf16>, vector<64x48xf32> -> vector<64x48xf32>
    %68 = arith.addf %61, %67 : vector<64x48xf32>
    %c0_72 = arith.constant 0 : index
    %c2_73 = arith.constant 2 : index
    %c1_74 = arith.constant 1 : index
    %c0_75 = arith.constant 0 : index
    %69 = vector.load %arg9[%c0_72, %c2_73, %c1_74, %c0_75] : memref<4x6x6x48xf32, #tpu.memory_space<vmem>>, vector<4x4x4x48xf32>
    %70 = vector.shape_cast %69 : vector<4x4x4x48xf32> to vector<64x48xf32>
    %71 = arith.truncf %70 : vector<64x48xf32> to vector<64x48xbf16>
    %c7 = arith.constant 7 : index
    %c0_76 = arith.constant 0 : index
    %c0_77 = arith.constant 0 : index
    %72 = vector.load %arg6[%c7, %c0_76, %c0_77] : memref<9x48x48xbf16, #tpu.memory_space<vmem>>, vector<1x48x48xbf16>
    %73 = vector.shape_cast %72 : vector<1x48x48xbf16> to vector<48x48xbf16>
    %cst_78 = arith.constant dense<0.000000e+00> : vector<64x48xf32>
    %74 = tpu.matmul %71, %73, %cst_78 {dimension_numbers = #tpu.dot_dimension_numbers<[1], [0], [0], [1], [0, 0, 1, 1], [], []>} : vector<64x48xbf16>, vector<48x48xbf16>, vector<64x48xf32> -> vector<64x48xf32>
    %75 = arith.addf %68, %74 : vector<64x48xf32>
    %c0_79 = arith.constant 0 : index
    %c2_80 = arith.constant 2 : index
    %c2_81 = arith.constant 2 : index
    %c0_82 = arith.constant 0 : index
    %76 = vector.load %arg9[%c0_79, %c2_80, %c2_81, %c0_82] : memref<4x6x6x48xf32, #tpu.memory_space<vmem>>, vector<4x4x4x48xf32>
    %77 = vector.shape_cast %76 : vector<4x4x4x48xf32> to vector<64x48xf32>
    %78 = arith.truncf %77 : vector<64x48xf32> to vector<64x48xbf16>
    %c8 = arith.constant 8 : index
    %c0_83 = arith.constant 0 : index
    %c0_84 = arith.constant 0 : index
    %79 = vector.load %arg6[%c8, %c0_83, %c0_84] : memref<9x48x48xbf16, #tpu.memory_space<vmem>>, vector<1x48x48xbf16>
    %80 = vector.shape_cast %79 : vector<1x48x48xbf16> to vector<48x48xbf16>
    %cst_85 = arith.constant dense<0.000000e+00> : vector<64x48xf32>
    %81 = tpu.matmul %78, %80, %cst_85 {dimension_numbers = #tpu.dot_dimension_numbers<[1], [0], [0], [1], [0, 0, 1, 1], [], []>} : vector<64x48xbf16>, vector<48x48xbf16>, vector<64x48xf32> -> vector<64x48xf32>
    %82 = arith.addf %75, %81 : vector<64x48xf32>
    %c0_86 = arith.constant 0 : index
    %c0_87 = arith.constant 0 : index
    %83 = vector.load %arg7[%c0_86, %c0_87] : memref<1x48xf32, #tpu.memory_space<vmem>>, vector<1x48xf32>
    %84 = vector.broadcast %83 : vector<1x48xf32> to vector<64x48xf32>
    %85 = arith.addf %82, %84 : vector<64x48xf32>
    %86 = vector.shape_cast %85 : vector<64x48xf32> to vector<4x16x48xf32>
    %c0_88 = arith.constant 0 : index
    %c0_89 = arith.constant 0 : index
    %c0_90 = arith.constant 0 : index
    %87 = vector.load %arg8[%c0_88, %c0_89, %c0_90] : memref<4x16x48xf32, #tpu.memory_space<vmem>>, vector<4x16x48xf32>
    tpu.vector_store %arg8[%c0_88, %c0_89, %c0_90], %86 {strides = array<i32>} : memref<4x16x48xf32, #tpu.memory_space<vmem>>, vector<4x16x48xf32>,
    return
  }
  func.func @transform_0(%arg0: i32) -> (i32, i32, i32) {
    %c0_i32 = arith.constant 0 : i32
    %c0_i32_0 = arith.constant 0 : i32
    %c0_i32_1 = arith.constant 0 : i32
    return %arg0, %c0_i32, %c0_i32_0 : i32, i32, i32
  }
  func.func @transform_1(%arg0: i32) -> (i32, i32) {
    %c0_i32 = arith.constant 0 : i32
    %c0_i32_0 = arith.constant 0 : i32
    %c0_i32_1 = arith.constant 0 : i32
    return %c0_i32, %c0_i32_0 : i32, i32
  }
  func.func @transform_2(%arg0: i32) -> (i32, i32) {
    %c0_i32 = arith.constant 0 : i32
    %c0_i32_0 = arith.constant 0 : i32
    %c0_i32_1 = arith.constant 0 : i32
    return %c0_i32, %c0_i32_0 : i32, i32
  }
  func.func @transform_3(%arg0: i32) -> (i32, i32) {
    %c0_i32 = arith.constant 0 : i32
    %c0_i32_0 = arith.constant 0 : i32
    %c0_i32_1 = arith.constant 0 : i32
    return %c0_i32, %c0_i32_0 : i32, i32
  }
  func.func @transform_4(%arg0: i32) -> (i32, i32) {
    %c0_i32 = arith.constant 0 : i32
    %c0_i32_0 = arith.constant 0 : i32
    %c0_i32_1 = arith.constant 0 : i32
    return %c0_i32, %c0_i32_0 : i32, i32
  }
  func.func @transform_5(%arg0: i32) -> (i32, i32, i32) {
    %c0_i32 = arith.constant 0 : i32
    %c0_i32_0 = arith.constant 0 : i32
    %c0_i32_1 = arith.constant 0 : i32
    %c0_i32_2 = arith.constant 0 : i32
    return %c0_i32, %c0_i32_0, %c0_i32_1 : i32, i32, i32
  }
  func.func @transform_6(%arg0: i32) -> (i32, i32) {
    %c0_i32 = arith.constant 0 : i32
    %c0_i32_0 = arith.constant 0 : i32
    %c0_i32_1 = arith.constant 0 : i32
    return %c0_i32, %c0_i32_0 : i32, i32
  }
  func.func @transform_7(%arg0: i32) -> (i32, i32, i32) {
    %c0_i32 = arith.constant 0 : i32
    %c0_i32_0 = arith.constant 0 : i32
    %c0_i32_1 = arith.constant 0 : i32
    return %arg0, %c0_i32, %c0_i32_0 : i32, i32, i32
  }
}

</mosaic_0001>

<bundles_post_ra>
// kernel: tpu_custom_call.1
= control target key start
LH: loop header
LB: loop body
LE: loop exit
PB: predicated region body
PF: predicated region fallthrough
CT: control target
= control target key end

     0   :  { %12 = vsyncpa [#allocation4], 0  ;;  %s2770_s0 = inlined_call_operand.vmem [shape: bf16[4,16,48], index: 0, kind: input, shape index: {}]   ;;  %s2771_s1 = inlined_call_operand.vmem [shape: bf16[48,256], index: 1, kind: input, shape index: {}]   ;;  %s2772_s2 = inlined_call_operand.vmem [shape: f32[1,256], index: 2, kind: input, shape index: {}]   ;;  %s2773_s3 = inlined_call_operand.vmem [shape: bf16[256,48], index: 3, kind: input, shape index: {}]   ;;  %s2774_s4 = inlined_call_operand.vmem [shape: f32[1,48], index: 4, kind: input, shape index: {}]   ;;  %s2775_s5 = inlined_call_operand.hbm [shape: bf16[9,48,48], index: 5, kind: input, shape index: {}]   ;;  %s2776_s6 = inlined_call_operand.vmem [shape: f32[1,48], index: 6, kind: input, shape index: {}]   ;;  %s2777_s7 = inlined_call_operand.hbm [shape: f32[4,16,48], index: 7, kind: output, shape index: {}]  }
   0x1   :  { %13 = vsyncpa [#allocation5], 0  ;;  %s2481_s24 = smov [#allocation3]  }
   0x2   :  { %s29_s25 = sshll.u32 %s2481_s24, 4  ;;  %s30_s25 = int_to_ptr.vmem [resolvable:$true] %s29_s25 }
   0x3   :  { %s2445_s26 = scalar_lea.vmem %s30_s25, 3456  ;;  %p2450_p1 = scmp.lt.s32.totalorder %s30_s25, %s30_s25 }
   0x4   :  { %p2446_p0 = scmp.ne.s32.totalorder %s30_s25, %s2445_s26  ;;  %p2451_p2 = scmp.lt.s32.totalorder %s2445_s26, %s2445_s26 }
   0x6   :  { %p2452_p3 = por %p2451_p2, %p2450_p1 }
   0x8   :  { %p2453_p4 = pnand %p2452_p3, %p2446_p0 }
   0xa   :  { %2456 = shalt.err (!%p2453_p4)
}
   0xb   :  { %s2482_s27 = smov 64   ;;  %s2483_s28 = smov 4  }
   0xc   :  { %35 = dma.hbm_to_vmem [thread:$0]  %s2775_s5, 3456, %s30_s25, [#allocation4], %s2482_s27, %s2482_s27, %s2483_s28  }
   0xd   :  { %2477 = dma.done.wait [#allocation4], 3456  }
   0xe   :  { %2478 = vsyncadd [#allocation4], 4294963840  ;;  %v2484_v0 = vmov 0   ;;  %v2309_v1 = vld [vmem:[%s2771_s1 + $0x24] ss:$8 sps:$4 sm:$0xff]   ;;  %v2322_v8 = vld [vmem:[%s2773_s3 + $0x78] sm:$0xff]   ;;  %v58_v27 = vlaneseq }
   0xf   :  { %163 = vmatprep.mubr.bf16.mxu0 %v2484_v0  ;;  %v2311_v2 = vld [vmem:[%s2771_s1 + $0x20] ss:$8 sps:$4 sm:$0xff]   ;;  %141 = vmatprep.subr.bf16.mxu0 %v2309_v1  ;;  %v2312_v3 = vld [vmem:[%s2771_s1 + $0x14] ss:$8 sps:$4 sm:$0xff]   ;;  %v2314_v4 = vld [vmem:[%s2771_s1 + $0x10] ss:$8 sps:$4 sm:$0xff]  }
  0x10   :  { %142 = vmatpush1.bf16.msra.mxu0 %v2311_v2  ;;  %v2315_v5 = vld [vmem:[%s2771_s1 + $0x4] ss:$8 sps:$4 sm:$0xff]   ;;  %v2317_v6 = vld [vmem:[%s2771_s1] ss:$8 sps:$4 sm:$0xff]   ;;  %v2323_v9 = vld [vmem:[%s2773_s3 + $0x38] sm:$0xff]   ;;  %2072 = vmatprep.subr.bf16.mxu1 %v2322_v8  ;;  %vm118_vm0 = vcmask 392192  }
  0x11   :  { %143 = vmatprep.subr.bf16.mxu0 %v2312_v3  ;;  %v2318_v7 = vld [vmem:[%s2770_s0] sm:$0xff]   ;;  %v2324_v10 = vld [vmem:[%s2773_s3 + $0x70] sm:$0xff]   ;;  %2073 = vmatpush3.bf16.msra.mxu1 %v2323_v9  ;;  %v2326_v12 = vld [vmem:[%s2773_s3 + $0x68] sm:$0xff]   ;;  %v59_v28 = vshrl.u32 %v58_v27, 7  ;;  %vm428_vm1 = vcmask 390144   ;;  %vm478_vm2 = vcmask 388096  }
  0x12   :  { %v2325_v11 = vld [vmem:[%s2773_s3 + $0x30] sm:$0xff]   ;;  %2074 = vmatprep.subr.bf16.mxu1 %v2324_v10  ;;  %v2327_v13 = vld [vmem:[%s2773_s3 + $0x28] sm:$0xff]   ;;  %v2328_v15 = vld [vmem:[%s2773_s3 + $0x60] sm:$0xff]  }
  0x13   :  { %v2319_v14 = vld [vmem:[%s2770_s0 + $0x8] sm:$0xff]   ;;  %v2329_v16 = vld [vmem:[%s2773_s3 + $0x20] sm:$0xff]   ;;  %v2330_v17 = vld [vmem:[%s2773_s3 + $0x58] sm:$0xff]   ;;  %v64_v29 = vsub.s32 1, %v59_v28  ;;  %v60_v30 = vsub.s32 0, %v59_v28 }
  0x14   :  { %144 = vmatpush1.bf16.msra.mxu0 %v2314_v4  ;;  %v2331_v18 = vld [vmem:[%s2773_s3 + $0x18] sm:$0xff]   ;;  %v2320_v19 = vld [vmem:[%s2770_s0 + $0x10] sm:$0xff]   ;;  %v2334_v23 = vld [vmem:[%s2773_s3 + $0x48] sm:$0xff]  }
  0x15   :  { %145 = vmatprep.subr.bf16.mxu0 %v2315_v5  ;;  %2075 = vmatpush3.bf16.msra.mxu1 %v2325_v11  ;;  %v2321_v20 = vld [vmem:[%s2770_s0 + $0x18] sm:$0xff]   ;;  %v2332_v21 = vld [vmem:[%s2773_s3 + $0x50] sm:$0xff]   ;;  %v2335_v24 = vld [vmem:[%s2773_s3 + $0x8] sm:$0xff]  }
  0x16   :  { %2076 = vmatprep.subr.bf16.mxu1 %v2326_v12  ;;  %v2333_v22 = vld [vmem:[%s2773_s3 + $0x10] sm:$0xff]   ;;  %v2336_v25 = vld [vmem:[%s2773_s3 + $0x40] sm:$0xff]   ;;  %v2338_v27 = vld [vmem:[#allocation3 + $0x28] sm:$0xff]  }
  0x17   :  { %v2337_v26 = vld [vmem:[%s2773_s3] sm:$0xff]  }
  0x18   :  { %146 = vmatpush1.bf16.msra.mxu0 %v2317_v6  ;;  %v56_v31 = vld [vmem:[%s2772_s2] sm:$0x3] }
  0x19   :  { %2077 = vmatpush3.bf16.msra.mxu1 %v2327_v13  ;;  %v65_v33 = vrot.slane %v56_v31, %v64_v29  ;;  %v61_v34 = vrot.slane %v56_v31, %v60_v30  ;;  %2175 = vmatprep.subr.bf16.mxu0 %v2338_v27  ;;  %v2340_v28 = vld [vmem:[#allocation3 + $0x40] sm:$0xff]   ;;  %v2343_v30 = vld [vmem:[#allocation3 + $0x38] sm:$0xff]  }
  0x1a   :  { %2078 = vmatprep.subr.bf16.mxu1 %v2328_v15  ;;  %v2339_v29 = vld [vmem:[#allocation3 + $0x20] sm:$0xff]   ;;  %v2346_v31 = vld [vmem:[#allocation3 + $0x18] sm:$0xff]  }
  0x1b   :  { %1987 = vmatmul.mubr.msk.bf16.vlgmr.msra.gmra.mxu0 %vm118_vm0, %v2318_v7 }
  0x1c   :  { %173 = vmatprep.mubr.bf16.mxu0 %v2484_v0  ;;  %2176 = vmatpush3.bf16.msra.mxu0 %v2338_v27 }
  0x1d   :  { %2079 = vmatpush3.bf16.msra.mxu1 %v2329_v16  ;;  %2177 = vmatprep.subr.bf16.mxu0 %v2339_v29 }
  0x1e   :  { %2080 = vmatprep.subr.bf16.mxu1 %v2330_v17 }
  0x20   :  { %2178 = vmatpush3.bf16.msra.mxu0 %v2339_v29  ;;  %v2370_v29 = vld [vmem:[#allocation3 + $0x58] sm:$0xff]  }
  0x21   :  { %2081 = vmatpush3.bf16.msra.mxu1 %v2331_v18  ;;  %2179 = vmatprep.subr.bf16.mxu0 %v2346_v31 }
  0x22   :  { %2082 = vmatprep.subr.bf16.mxu1 %v2332_v21 }
  0x23   :  { %1988 = vmatmul.mubr.msk.bf16.gmra.mxu0 %vm118_vm0, %v2319_v14 }
  0x24   :  { %183 = vmatprep.mubr.bf16.mxu0 %v2484_v0  ;;  %2180 = vmatpush3.bf16.msra.mxu0 %v2346_v31 }
  0x25   :  { %2083 = vmatpush3.bf16.msra.mxu1 %v2333_v22 }
  0x26   :  { %2084 = vmatprep.subr.bf16.mxu1 %v2334_v23 }
  0x29   :  { %2085 = vmatpush3.bf16.msra.mxu1 %v2335_v24 }
  0x2a   :  { %2086 = vmatprep.subr.bf16.mxu1 %v2336_v25 }
  0x2b   :  { %1989 = vmatmul.mubr.msk.bf16.gmra.mxu0 %vm118_vm0, %v2320_v19 }
  0x2c   :  { %193 = vmatprep.mubr.bf16.mxu0 %v2484_v0 }
  0x2d   :  { %2087 = vmatpush3.bf16.msra.mxu1 %v2337_v26  ;;  %v2485_v26 = vmov 0.0  }
  0x2e   :  { %430 = vst.msk [vmem:[#allocation2 + $0x8] sm:$0x3f] %vm428_vm1, %v2485_v26  ;;  %431 = vst.msk [vmem:[#allocation2 + $0x10] sm:$0x3f] %vm428_vm1, %v2485_v26  ;;  %2203 = vmatprep.subr.bf16.mxu1 %v2340_v28 }
  0x2f   :  { %429 = vst.msk [vmem:[#allocation2] sm:$0x3f] %vm428_vm1, %v2485_v26  ;;  %432 = vst.msk [vmem:[#allocation2 + $0x18] sm:$0x3f] %vm428_vm1, %v2485_v26 }
  0x30   :  { %433 = vst.msk [vmem:[#allocation2 + $0x20] sm:$0x3f] %vm428_vm1, %v2485_v26  ;;  %434 = vst.msk [vmem:[#allocation2 + $0x28] sm:$0x3f] %vm428_vm1, %v2485_v26 }
  0x31   :  { %435 = vst.msk [vmem:[#allocation2 + $0x30] sm:$0x3f] %vm428_vm1, %v2485_v26  ;;  %436 = vst.msk [vmem:[#allocation2 + $0x38] sm:$0x3f] %vm428_vm1, %v2485_v26 }
  0x32   :  { %437 = vst.msk [vmem:[#allocation2 + $0x40] sm:$0x3f] %vm428_vm1, %v2485_v26  ;;  %438 = vst.msk [vmem:[#allocation2 + $0x48] sm:$0x3f] %vm428_vm1, %v2485_v26 }
  0x33   :  { %1990 = vmatmul.mubr.msk.bf16.gmra.mxu0 %vm118_vm0, %v2321_v20  ;;  %439 = vst.msk [vmem:[#allocation2 + $0x50] sm:$0x3f] %vm428_vm1, %v2485_v26  ;;  %440 = vst.msk [vmem:[#allocation2 + $0x58] sm:$0x3f] %vm428_vm1, %v2485_v26 }
  0x34   :  { %441 = vst.msk [vmem:[#allocation2 + $0x60] sm:$0x3f] %vm428_vm1, %v2485_v26  ;;  %442 = vst.msk [vmem:[#allocation2 + $0x68] sm:$0x3f] %vm428_vm1, %v2485_v26 }
  0x35   :  { %443 = vst.msk [vmem:[#allocation2 + $0x70] sm:$0x3f] %vm428_vm1, %v2485_v26  ;;  %444 = vst.msk [vmem:[#allocation2 + $0x78] sm:$0x3f] %vm428_vm1, %v2485_v26 }
  0x36   :  { %445 = vst.msk [vmem:[#allocation2 + $0x80] sm:$0x3f] %vm428_vm1, %v2485_v26  ;;  %446 = vst.msk [vmem:[#allocation2 + $0x88] sm:$0x3f] %vm428_vm1, %v2485_v26 }
  0x37   :  { %447 = vst.msk [vmem:[#allocation2 + $0x90] sm:$0x3f] %vm428_vm1, %v2485_v26  ;;  %448 = vst.msk [vmem:[#allocation2 + $0x98] sm:$0x3f] %vm428_vm1, %v2485_v26 }
  0x38   :  { %449 = vst.msk [vmem:[#allocation2 + $0xa0] sm:$0x3f] %vm428_vm1, %v2485_v26  ;;  %450 = vst.msk [vmem:[#allocation2 + $0xa8] sm:$0x3f] %vm428_vm1, %v2485_v26 }
  0x39   :  { %451 = vst.msk [vmem:[#allocation2 + $0xb0] sm:$0x3f] %vm428_vm1, %v2485_v26  ;;  %452 = vst.msk [vmem:[#allocation2 + $0xb8] sm:$0x3f] %vm428_vm1, %v2485_v26 }
  0xdb   :  { %v165_v32 = vpop.f32.mrf.mxu0 }
  0xdc   :  { %v166_v39 = vadd.f32 %v165_v32, %v61_v34  ;;  %v2347_v32 = vld [vmem:[#allocation3 + $0x30] sm:$0xff]  }
  0xdd   :  { %v167_v35 = vpop.f32.mrf.mxu0 }
  0xde   :  { %v168_v37 = vadd.f32 %v167_v35, %v65_v33  ;;  %v204_v46 = vmax.f32 %v166_v39, 0.0 }
  0xdf   :  { %v169_v36 = vpop.f32.mrf.mxu0 }
  0xe0   :  { %v170_v38 = vadd.f32 %v169_v36, %v61_v34  ;;  %v205_v44 = vmax.f32 %v168_v37, 0.0  ;;  %v2650_v36 = vld [vmem:[%s2774_s4] ss:$0 sm:$0xff] }
  0xe1   :  { %v171_v40 = vpop.f32.mrf.mxu0 }
  0xe2   :  { %v172_v41 = vadd.f32 %v171_v40, %v65_v33  ;;  %v206_v42 = vmax.f32 %v170_v38, 0.0 }
  0xe3   :  { %v175_v43 = vpop.f32.mrf.mxu0 }
  0xe4   :  { %v207_v45 = vmax.f32 %v172_v41, 0.0  ;;  %v220_v49 = vpack.c.bf16 %v206_v42, %v204_v46  ;;  %v176_v53 = vadd.f32 %v175_v43, %v61_v34 }
  0xe5   :  { %v177_v47 = vpop.f32.mrf.mxu0 }
  0xe6   :  { %v221_v48 = vpack.c.bf16 %v207_v45, %v205_v44  ;;  %v178_v51 = vadd.f32 %v177_v47, %v65_v33  ;;  %v208_v60 = vmax.f32 %v176_v53, 0.0 }
  0xe7   :  { %v179_v50 = vpop.f32.mrf.mxu0 }
  0xe8   :  { %v180_v52 = vadd.f32 %v179_v50, %v61_v34  ;;  %395 = vmatprep.mubr.bf16.mxu1 %v221_v48  ;;  %v209_v58 = vmax.f32 %v178_v51, 0.0 }
  0xe9   :  { %v181_v54 = vpop.f32.mrf.mxu0  ;;  %396 = vmatmul.mubr.bf16.vlgmr.msra.gmra.mxu1 %v220_v49 }
  0xea   :  { %v182_v55 = vadd.f32 %v181_v54, %v65_v33  ;;  %v210_v56 = vmax.f32 %v180_v52, 0.0  ;;  %2204 = vmatpush3.bf16.msra.mxu1 %v2340_v28 }
  0xeb   :  { %v185_v57 = vpop.f32.mrf.mxu0  ;;  %2205 = vmatprep.subr.bf16.mxu1 %v2343_v30 }
  0xec   :  { %v211_v59 = vmax.f32 %v182_v55, 0.0  ;;  %v222_v63 = vpack.c.bf16 %v210_v56, %v208_v60  ;;  %v186_v3 = vadd.f32 %v185_v57, %v61_v34 }
  0xed   :  { %v187_v61 = vpop.f32.mrf.mxu0 }
  0xee   :  { %v223_v62 = vpack.c.bf16 %v211_v59, %v209_v58  ;;  %v188_v1 = vadd.f32 %v187_v61, %v65_v33  ;;  %v212_v10 = vmax.f32 %v186_v3, 0.0  ;;  %2206 = vmatpush3.bf16.msra.mxu1 %v2343_v30 }
  0xef   :  { %v189_v0 = vpop.f32.mrf.mxu0  ;;  %2207 = vmatprep.subr.bf16.mxu1 %v2347_v32 }
  0xf0   :  { %v190_v2 = vadd.f32 %v189_v0, %v61_v34  ;;  %403 = vmatprep.mubr.bf16.mxu1 %v223_v62  ;;  %v213_v8 = vmax.f32 %v188_v1, 0.0 }
  0xf1   :  { %v191_v4 = vpop.f32.mrf.mxu0  ;;  %404 = vmatmul.mubr.bf16.gmra.mxu1 %v222_v63 }
  0xf2   :  { %v192_v5 = vadd.f32 %v191_v4, %v65_v33  ;;  %v214_v6 = vmax.f32 %v190_v2, 0.0  ;;  %2208 = vmatpush3.bf16.msra.mxu1 %v2347_v32 }
  0xf3   :  { %v195_v7 = vpop.f32.mrf.mxu0 }
  0xf4   :  { %v215_v9 = vmax.f32 %v192_v5, 0.0  ;;  %v224_v13 = vpack.c.bf16 %v214_v6, %v212_v10  ;;  %v196_v17 = vadd.f32 %v195_v7, %v61_v34 }
  0xf5   :  { %v197_v11 = vpop.f32.mrf.mxu0 }
  0xf6   :  { %v225_v12 = vpack.c.bf16 %v215_v9, %v213_v8  ;;  %v198_v15 = vadd.f32 %v197_v11, %v65_v33  ;;  %v216_v23 = vmax.f32 %v196_v17, 0.0  ;;  %v2358_v17 = vld [vmem:[#allocation3 + $0x8] sm:$0xff]  }
  0xf7   :  { %v199_v14 = vpop.f32.mrf.mxu0 }
  0xf8   :  { %v200_v16 = vadd.f32 %v199_v14, %v61_v34  ;;  %411 = vmatprep.mubr.bf16.mxu1 %v225_v12  ;;  %v217_v21 = vmax.f32 %v198_v15, 0.0  ;;  %v2644_v34 = vld [vmem:[#allocation3 + $0x70] sm:$0xff]  }
  0xf9   :  { %v201_v18 = vpop.f32.mrf.mxu0  ;;  %412 = vmatmul.mubr.bf16.gmra.mxu1 %v224_v13  ;;  %2231 = vmatprep.subr.bf16.mxu1 %v2644_v34 }
  0xfa   :  { %v202_v19 = vadd.f32 %v201_v18, %v65_v33  ;;  %v218_v20 = vmax.f32 %v200_v16, 0.0  ;;  %v2641_v33 = vld [vmem:[#allocation3 + $0x10] sm:$0xff]  }
  0xfb   :  { %2189 = vmatprep.subr.bf16.mxu0 %v2641_v33 }
  0xfc   :  { %v219_v22 = vmax.f32 %v202_v19, 0.0  ;;  %v226_v25 = vpack.c.bf16 %v218_v20, %v216_v23  ;;  %v2363_v20 = vld [vmem:[#allocation3 + $0x68] sm:$0xff]  }
  0xfe   :  { %v227_v24 = vpack.c.bf16 %v219_v22, %v217_v21 }
 0x100   :  { %419 = vmatprep.mubr.bf16.mxu1 %v227_v24  ;;  %v2368_v24 = vld [vmem:[#allocation3] sm:$0xff]  }
 0x101   :  { %420 = vmatmul.mubr.bf16.gmra.mxu1 %v226_v25  ;;  %v2369_v25 = vld [vmem:[#allocation3 + $0x60] sm:$0xff]  }
 0x1a9   :  { %v2088_v35 = vpop.f32.mrf.mxu1 }
 0x1ab   :  { %v2089_v37 = vpop.f32.mrf.mxu1 }
 0x1ac   :  { %v2090_v38 = vadd.f32 %v2089_v37, %v2088_v35  ;;  %v2379_v35 = vld [vmem:[#allocation3 + $0xa0] sm:$0xff]  }
 0x1ad   :  { %v2091_v39 = vpop.f32.mrf.mxu1 }
 0x1ae   :  { %v398_v40 = vadd.f32 %v2090_v38, %v2650_v36 }
 0x1af   :  { %v2092_v41 = vpop.f32.mrf.mxu1 }
 0x1b0   :  { %v461_v42 = vcombine.high %v398_v40, %v398_v40  ;;  %479 = vst.msk [vmem:[#allocation2 + $0x9] sm:$0xf] %vm478_vm2, %v398_v40  ;;  %v2093_v43 = vadd.f32 %v2092_v41, %v2091_v39 }
 0x1b1   :  { %v2094_v44 = vpop.f32.mrf.mxu1 }
 0x1b2   :  { %480 = vst.msk [vmem:[#allocation2 + $0x11] sm:$0xf] %vm478_vm2, %v461_v42  ;;  %v401_v45 = vadd.f32 %v2093_v43, %v2650_v36 }
 0x1b3   :  { %v2095_v46 = vpop.f32.mrf.mxu1 }
 0x1b4   :  { %v462_v47 = vcombine.high %v401_v45, %v401_v45  ;;  %481 = vst.msk [vmem:[#allocation2 + $0x19] sm:$0xf] %vm478_vm2, %v401_v45  ;;  %v2096_v48 = vadd.f32 %v2095_v46, %v2094_v44 }
 0x1b5   :  { %v2097_v49 = vpop.f32.mrf.mxu1 }
 0x1b6   :  { %482 = vst.msk [vmem:[#allocation2 + $0x21] sm:$0xf] %vm478_vm2, %v462_v47  ;;  %v406_v50 = vadd.f32 %v2096_v48, %v2650_v36 }
 0x1b7   :  { %v2098_v51 = vpop.f32.mrf.mxu1  ;;  %v2341_v56 = vld [vmem:[#allocation2 + $0x1] ss:$8 sps:$4 sm:$0xff]  }
 0x1b8   :  { %v463_v52 = vcombine.high %v406_v50, %v406_v50  ;;  %483 = vst.msk [vmem:[#allocation2 + $0x39] sm:$0xf] %vm478_vm2, %v406_v50  ;;  %v2099_v53 = vadd.f32 %v2098_v51, %v2097_v49  ;;  %v2344_v61 = vld [vmem:[#allocation2 + $0x2] ss:$8 sps:$4 sm:$0xff]  }
 0x1b9   :  { %v2100_v54 = vpop.f32.mrf.mxu1  ;;  %v2364_v39 = vld [vmem:[#allocation2] ss:$8 sps:$4 sm:$0xff]  }
 0x1ba   :  { %484 = vst.msk [vmem:[#allocation2 + $0x41] sm:$0xf] %vm478_vm2, %v463_v52  ;;  %v409_v55 = vadd.f32 %v2099_v53, %v2650_v36  ;;  %v2366_v44 = vld [vmem:[#allocation2 + $0x9] ss:$8 sps:$4 sm:$0xff]  }
 0x1bb   :  { %v2101_v57 = vpop.f32.mrf.mxu1  ;;  %v2342_v58 = vld [vmem:[#allocation2 + $0x11] ss:$8 sps:$4 sm:$0xff]  }
 0x1bc   :  { %v464_v59 = vcombine.high %v409_v55, %v409_v55  ;;  %485 = vst.msk [vmem:[#allocation2 + $0x49] sm:$0xf] %vm478_vm2, %v409_v55  ;;  %v2102_v60 = vadd.f32 %v2101_v57, %v2100_v54  ;;  %v2345_v62 = vld [vmem:[#allocation2 + $0x12] ss:$8 sps:$4 sm:$0xff]   ;;  %v601_v0 = vpack.c.bf16 %v2342_v58, %v2341_v56 }
 0x1bd   :  { %v2103_v63 = vpop.f32.mrf.mxu1  ;;  %v850_v2 = vpack.c.bf16 %v2345_v62, %v2344_v61  ;;  %v2367_v37 = vld [vmem:[#allocation2 + $0x19] ss:$8 sps:$4 sm:$0xff]   ;;  %v2380_v54 = vld [vmem:[#allocation3 + $0x50] sm:$0xff]   ;;  %v2390_v62 = vld [vmem:[#allocation3 + $0x48] sm:$0xff]  }
 0x1be   :  { %486 = vst.msk [vmem:[#allocation2 + $0x51] sm:$0xf] %vm478_vm2, %v464_v59  ;;  %v414_v1 = vadd.f32 %v2102_v60, %v2650_v36  ;;  %2181 = vmatprep.mubr.msk.bf16.mxu0 %vm118_vm0, %v601_v0  ;;  %v1174_v47 = vpack.c.bf16 %v2367_v37, %v2366_v44  ;;  %v2385_v61 = vld [vmem:[#allocation3 + $0x98] sm:$0xff]  }
 0x1bf   :  { %v2104_v3 = vpop.f32.mrf.mxu1  ;;  %2209 = vmatprep.mubr.msk.bf16.mxu1 %vm118_vm0, %v850_v2  ;;  %v2348_v8 = vld [vmem:[#allocation2 + $0x31] ss:$8 sps:$4 sm:$0xff]  }
 0x1c0   :  { %v465_v4 = vcombine.high %v414_v1, %v414_v1  ;;  %487 = vst.msk [vmem:[#allocation2 + $0x69] sm:$0xf] %vm478_vm2, %v414_v1  ;;  %v2105_v5 = vadd.f32 %v2104_v3, %v2103_v63  ;;  %v2350_v13 = vld [vmem:[#allocation2 + $0x32] ss:$8 sps:$4 sm:$0xff]  }
 0x1c1   :  { %v2106_v6 = vpop.f32.mrf.mxu1  ;;  %v2371_v49 = vld [vmem:[#allocation2 + $0x30] ss:$8 sps:$4 sm:$0xff]  }
 0x1c2   :  { %488 = vst.msk [vmem:[#allocation2 + $0x71] sm:$0xf] %vm478_vm2, %v465_v4  ;;  %v417_v7 = vadd.f32 %v2105_v5, %v2650_v36  ;;  %v2373_v53 = vld [vmem:[#allocation2 + $0x39] ss:$8 sps:$4 sm:$0xff]   ;;  %v2391_v2 = vld [vmem:[#allocation3 + $0x90] sm:$0xff]  }
 0x1c3   :  { %v2107_v9 = vpop.f32.mrf.mxu1  ;;  %v2349_v10 = vld [vmem:[#allocation2 + $0x41] ss:$8 sps:$4 sm:$0xff]  }
 0x1c4   :  { %v466_v11 = vcombine.high %v417_v7, %v417_v7  ;;  %489 = vst.msk [vmem:[#allocation2 + $0x79] sm:$0xf] %vm478_vm2, %v417_v7  ;;  %v2108_v12 = vadd.f32 %v2107_v9, %v2106_v6  ;;  %v2351_v14 = vld [vmem:[#allocation2 + $0x42] ss:$8 sps:$4 sm:$0xff]   ;;  %v602_v16 = vpack.c.bf16 %v2349_v10, %v2348_v8  ;;  %v2388_v8 = vld [vmem:[#allocation2 + $0x10] ss:$8 sps:$4 sm:$0xff]  }
 0x1c5   :  { %v2109_v15 = vpop.f32.mrf.mxu1  ;;  %v851_v19 = vpack.c.bf16 %v2351_v14, %v2350_v13  ;;  %v2372_v48 = vld [vmem:[#allocation2 + $0x40] ss:$8 sps:$4 sm:$0xff]   ;;  %v2401_v13 = vld [vmem:[#allocation3 + $0xd0] sm:$0xff]  }
 0x1c6   :  { %490 = vst.msk [vmem:[#allocation2 + $0x81] sm:$0xf] %vm478_vm2, %v466_v11  ;;  %v422_v18 = vadd.f32 %v2108_v12, %v2650_v36  ;;  %2182 = vmatmul.mubr.msk.bf16.vlgmr.msra.gmra.mxu0 %vm118_vm0, %v602_v16  ;;  %v2374_v50 = vld [vmem:[#allocation2 + $0x49] ss:$8 sps:$4 sm:$0xff]   ;;  %v544_v55 = vpack.c.bf16 %v2372_v48, %v2371_v49  ;;  %v2387_v63 = vld [vmem:[#allocation2 + $0x18] ss:$8 sps:$4 sm:$0xff]  }
 0x1c7   :  { %v2110_v21 = vpop.f32.mrf.mxu1  ;;  %2210 = vmatmul.mubr.msk.bf16.vlgmr.msra.gmra.mxu1 %vm118_vm0, %v851_v19  ;;  %2190 = vmatpush3.bf16.msra.mxu0 %v2641_v33  ;;  %v2353_v27 = vld [vmem:[#allocation2 + $0x61] ss:$8 sps:$4 sm:$0xff]   ;;  %v1175_v58 = vpack.c.bf16 %v2374_v50, %v2373_v53  ;;  %v2418_v44 = vld [vmem:[#allocation2 + $0x52] ss:$8 sps:$4 sm:$0xff]  }
 0x1c8   :  { %v467_v22 = vcombine.high %v422_v18, %v422_v18  ;;  %491 = vst.msk [vmem:[#allocation2 + $0x99] sm:$0xf] %vm478_vm2, %v422_v18  ;;  %v2111_v23 = vadd.f32 %v2110_v21, %v2109_v15  ;;  %2191 = vmatprep.subr.bf16.mxu0 %v2358_v17  ;;  %2232 = vmatpush3.bf16.msra.mxu1 %v2644_v34  ;;  %v2355_v31 = vld [vmem:[#allocation2 + $0x62] ss:$8 sps:$4 sm:$0xff]   ;;  %v2396_v15 = vld [vmem:[#allocation2 + $0x50] ss:$8 sps:$4 sm:$0xff]  }
 0x1c9   :  { %2233 = vmatprep.subr.bf16.mxu1 %v2363_v20  ;;  %v2375_v56 = vld [vmem:[#allocation2 + $0x60] ss:$8 sps:$4 sm:$0xff]   ;;  %v2423_v53 = vld [vmem:[#allocation3 + $0xb0] sm:$0xff]  }
 0x1ca   :  { %492 = vst.msk [vmem:[#allocation2 + $0xa1] sm:$0xf] %vm478_vm2, %v467_v22  ;;  %v425_v26 = vadd.f32 %v2111_v23, %v2650_v36  ;;  %v2365_v36 = vld [vmem:[#allocation2 + $0x10] ss:$8 sps:$4 sm:$0xff]   ;;  %v2389_v5 = vld [vmem:[#allocation2 + $0x20] ss:$8 sps:$4 sm:$0xff]  }
 0x1cb   :  { %v2354_v28 = vld [vmem:[#allocation2 + $0x71] ss:$8 sps:$4 sm:$0xff]   ;;  %2192 = vmatpush3.bf16.msra.mxu0 %v2358_v17  ;;  %v543_v46 = vpack.c.bf16 %v2365_v36, %v2364_v39  ;;  %v2392_v11 = vld [vmem:[#allocation3 + $0x88] sm:$0xff]   ;;  %v1499_v12 = vpack.c.bf16 %v2389_v5, %v2388_v8 }
 0x1cc   :  { %v468_v30 = vcombine.high %v425_v26, %v425_v26  ;;  %493 = vst.msk [vmem:[#allocation2 + $0xa9] sm:$0xf] %vm478_vm2, %v425_v26  ;;  %v2356_v32 = vld [vmem:[#allocation2 + $0x72] ss:$8 sps:$4 sm:$0xff]   ;;  %v603_v33 = vpack.c.bf16 %v2354_v28, %v2353_v27  ;;  %2234 = vmatpush3.bf16.msra.mxu1 %v2363_v20  ;;  %2193 = vmatprep.subr.bf16.mxu0 %v2368_v24  ;;  %v2395_v17 = vld [vmem:[#allocation2 + $0x40] ss:$8 sps:$4 sm:$0xff]  }
 0x1cd   :  { %v852_v34 = vpack.c.bf16 %v2356_v32, %v2355_v31  ;;  %2235 = vmatprep.subr.bf16.mxu1 %v2369_v25  ;;  %v2376_v51 = vld [vmem:[#allocation2 + $0x70] ss:$8 sps:$4 sm:$0xff]   ;;  %v2400_v19 = vld [vmem:[#allocation2 + $0x80] ss:$8 sps:$4 sm:$0xff]   ;;  %v1500_v23 = vpack.c.bf16 %v2396_v15, %v2395_v17 }
 0x1ce   :  { %494 = vst.msk [vmem:[#allocation2 + $0xb1] sm:$0xf] %vm478_vm2, %v468_v30  ;;  %2185 = vmatprep.mubr.msk.bf16.mxu0 %vm118_vm0, %v603_v33  ;;  %v2378_v52 = vld [vmem:[#allocation2 + $0x79] ss:$8 sps:$4 sm:$0xff]   ;;  %v2377_v57 = vld [vmem:[#allocation2 + $0x69] ss:$8 sps:$4 sm:$0xff]   ;;  %v545_v59 = vpack.c.bf16 %v2376_v51, %v2375_v56 }
 0x1cf   :  { %2213 = vmatprep.mubr.msk.bf16.mxu1 %vm118_vm0, %v852_v34  ;;  %2194 = vmatpush3.bf16.msra.mxu0 %v2368_v24  ;;  %v2359_v38 = vld [vmem:[#allocation2 + $0x91] ss:$8 sps:$4 sm:$0xff]   ;;  %v1176_v60 = vpack.c.bf16 %v2378_v52, %v2377_v57  ;;  %v2402_v24 = vld [vmem:[#allocation3 + $0x80] sm:$0xff]   ;;  %v2430_v57 = vld [vmem:[#allocation3 + $0xa8] sm:$0xff]  }
 0x1d0   :  { %2236 = vmatpush3.bf16.msra.mxu1 %v2369_v25  ;;  %2217 = vmatprep.subr.bf16.mxu0 %v2370_v29  ;;  %v2361_v41 = vld [vmem:[#allocation2 + $0x92] ss:$8 sps:$4 sm:$0xff]   ;;  %v2407_v25 = vld [vmem:[#allocation3 + $0xc8] sm:$0xff]   ;;  %v2413_v33 = vld [vmem:[#allocation3 + $0xc0] sm:$0xff]  }
 0x1d1   :  { %2259 = vmatprep.subr.bf16.mxu1 %v2379_v35  ;;  %v2386_v3 = vld [vmem:[#allocation2 + $0x8] ss:$8 sps:$4 sm:$0xff]   ;;  %v2383_v6 = vld [vmem:[#allocation2 + $0x99] ss:$8 sps:$4 sm:$0xff]  }
 0x1d2   :  { %v2381_v4 = vld [vmem:[#allocation2 + $0x90] ss:$8 sps:$4 sm:$0xff]   ;;  %v1012_v10 = vpack.c.bf16 %v2387_v63, %v2386_v3  ;;  %v2411_v34 = vld [vmem:[#allocation2 + $0x22] ss:$8 sps:$4 sm:$0xff]  }
 0x1d3   :  { %v2360_v40 = vld [vmem:[#allocation2 + $0xa1] ss:$8 sps:$4 sm:$0xff]   ;;  %v2399_v21 = vld [vmem:[#allocation2 + $0x70] ss:$8 sps:$4 sm:$0xff]  }
 0x1d4   :  { %v2362_v42 = vld [vmem:[#allocation2 + $0xa2] ss:$8 sps:$4 sm:$0xff]   ;;  %v604_v43 = vpack.c.bf16 %v2360_v40, %v2359_v38  ;;  %v1501_v27 = vpack.c.bf16 %v2400_v19, %v2399_v21  ;;  %v2412_v28 = vld [vmem:[#allocation3 + $0x78] sm:$0xff]  }
 0x1d5   :  { %v853_v45 = vpack.c.bf16 %v2362_v42, %v2361_v41  ;;  %v2382_v0 = vld [vmem:[#allocation2 + $0xa0] ss:$8 sps:$4 sm:$0xff]   ;;  %v2406_v31 = vld [vmem:[#allocation2 + $0xb0] ss:$8 sps:$4 sm:$0xff]  }
 0x1d6   :  { %2186 = vmatmul.mubr.msk.bf16.gmra.mxu0 %vm118_vm0, %v604_v43  ;;  %v2384_v1 = vld [vmem:[#allocation2 + $0xa9] ss:$8 sps:$4 sm:$0xff]   ;;  %v546_v7 = vpack.c.bf16 %v2382_v0, %v2381_v4  ;;  %v2393_v16 = vld [vmem:[#allocation2 + $0x38] ss:$8 sps:$4 sm:$0xff]  }
 0x1d7   :  { %2214 = vmatmul.mubr.msk.bf16.gmra.mxu1 %vm118_vm0, %v853_v45  ;;  %2195 = vmatprep.mubr.msk.bf16.mxu0 %vm118_vm0, %v543_v46  ;;  %v1177_v9 = vpack.c.bf16 %v2384_v1, %v2383_v6  ;;  %v2394_v14 = vld [vmem:[#allocation2 + $0x48] ss:$8 sps:$4 sm:$0xff]   ;;  %v2398_v18 = vld [vmem:[#allocation2 + $0x78] ss:$8 sps:$4 sm:$0xff]  }
 0x1d8   :  { %2237 = vmatprep.mubr.msk.bf16.mxu1 %vm118_vm0, %v1174_v47  ;;  %v2397_v20 = vld [vmem:[#allocation2 + $0x68] ss:$8 sps:$4 sm:$0xff]   ;;  %v1013_v22 = vpack.c.bf16 %v2394_v14, %v2393_v16  ;;  %v2403_v30 = vld [vmem:[#allocation2 + $0x98] ss:$8 sps:$4 sm:$0xff]  }
 0x1d9   :  { %v1014_v26 = vpack.c.bf16 %v2398_v18, %v2397_v20  ;;  %v2409_v32 = vld [vmem:[#allocation2 + $0x1a] ss:$8 sps:$4 sm:$0xff]   ;;  %v2408_v36 = vld [vmem:[#allocation2 + $0xa] ss:$8 sps:$4 sm:$0xff]  }
 0x1da   :  { %v2410_v38 = vld [vmem:[#allocation2 + $0x12] ss:$8 sps:$4 sm:$0xff]   ;;  %v1336_v40 = vpack.c.bf16 %v2409_v32, %v2408_v36  ;;  %v2422_v47 = vld [vmem:[#allocation2 + $0x82] ss:$8 sps:$4 sm:$0xff]  }
 0x1db   :  { %v2414_v41 = vld [vmem:[#allocation3 + $0xb8] sm:$0xff]   ;;  %v1823_v42 = vpack.c.bf16 %v2411_v34, %v2410_v38  ;;  %v2416_v43 = vld [vmem:[#allocation2 + $0x4a] ss:$8 sps:$4 sm:$0xff]  }
 0x1dc   :  { %v2415_v45 = vld [vmem:[#allocation2 + $0x3a] ss:$8 sps:$4 sm:$0xff]   ;;  %v2419_v50 = vld [vmem:[#allocation2 + $0x6a] ss:$8 sps:$4 sm:$0xff]  }
 0x1dd   :  { %v2420_v46 = vld [vmem:[#allocation2 + $0x7a] ss:$8 sps:$4 sm:$0xff]   ;;  %v1337_v49 = vpack.c.bf16 %v2416_v43, %v2415_v45  ;;  %v2425_v56 = vld [vmem:[#allocation2 + $0xaa] ss:$8 sps:$4 sm:$0xff]  }
 0x1de   :  { %2196 = vmatmul.mubr.msk.bf16.vlgmr.msra.gmra.mxu0 %vm118_vm0, %v544_v55  ;;  %v2417_v48 = vld [vmem:[#allocation2 + $0x42] ss:$8 sps:$4 sm:$0xff]   ;;  %v2421_v51 = vld [vmem:[#allocation2 + $0x72] ss:$8 sps:$4 sm:$0xff]  }
 0x1df   :  { %2218 = vmatpush3.bf16.msra.mxu0 %v2370_v29  ;;  %2238 = vmatmul.mubr.msk.bf16.vlgmr.msra.gmra.mxu1 %vm118_vm0, %v1175_v58  ;;  %v2404_v29 = vld [vmem:[#allocation2 + $0xa8] ss:$8 sps:$4 sm:$0xff]   ;;  %v1824_v52 = vpack.c.bf16 %v2418_v44, %v2417_v48  ;;  %v1825_v55 = vpack.c.bf16 %v2422_v47, %v2421_v51 }
 0x1e0   :  { %2199 = vmatprep.mubr.msk.bf16.mxu0 %vm118_vm0, %v545_v59  ;;  %2241 = vmatprep.mubr.msk.bf16.mxu1 %vm118_vm0, %v1176_v60  ;;  %v1015_v37 = vpack.c.bf16 %v2404_v29, %v2403_v30  ;;  %v2427_v58 = vld [vmem:[#allocation2 + $0xb2] ss:$8 sps:$4 sm:$0xff]   ;;  %v2429_v59 = vld [vmem:[#allocation2 + $0x21] ss:$8 sps:$4 sm:$0xff]  }
 0x1e1   :  { %2219 = vmatprep.subr.bf16.mxu0 %v2380_v54  ;;  %2260 = vmatpush3.bf16.msra.mxu1 %v2379_v35  ;;  %v2405_v35 = vld [vmem:[#allocation2 + $0xa0] ss:$8 sps:$4 sm:$0xff]   ;;  %v2433_v5 = vld [vmem:[#allocation2 + $0x71] ss:$8 sps:$4 sm:$0xff]  }
 0x1e2   :  { %2261 = vmatprep.subr.bf16.mxu1 %v2385_v61  ;;  %v1502_v39 = vpack.c.bf16 %v2406_v31, %v2405_v35  ;;  %v2424_v60 = vld [vmem:[#allocation2 + $0x9a] ss:$8 sps:$4 sm:$0xff]  }
 0x1e3   :  { %2220 = vmatpush3.bf16.msra.mxu0 %v2380_v54  ;;  %v1338_v54 = vpack.c.bf16 %v2420_v46, %v2419_v50  ;;  %v1339_v63 = vpack.c.bf16 %v2425_v56, %v2424_v60  ;;  %v2434_v3 = vld [vmem:[#allocation2 + $0x81] ss:$8 sps:$4 sm:$0xff]   ;;  %v2436_v8 = vld [vmem:[#allocation2 + $0xb1] ss:$8 sps:$4 sm:$0xff]  }
 0x1e4   :  { %2221 = vmatprep.subr.bf16.mxu0 %v2390_v62  ;;  %v2431_v4 = vld [vmem:[#allocation2 + $0x41] ss:$8 sps:$4 sm:$0xff]  }
 0x1e5   :  { %2262 = vmatpush3.bf16.msra.mxu1 %v2385_v61  ;;  %v2426_v61 = vld [vmem:[#allocation2 + $0xa2] ss:$8 sps:$4 sm:$0xff]  }
 0x1e6   :  { %2200 = vmatmul.mubr.msk.bf16.gmra.mxu0 %vm118_vm0, %v546_v7  ;;  %2263 = vmatprep.subr.bf16.mxu1 %v2391_v2  ;;  %v1826_v0 = vpack.c.bf16 %v2427_v58, %v2426_v61  ;;  %v1663_v7 = vpack.c.bf16 %v2434_v3, %v2433_v5 }
 0x1e7   :  { %2242 = vmatmul.mubr.msk.bf16.gmra.mxu1 %vm118_vm0, %v1177_v9  ;;  %2223 = vmatprep.mubr.msk.bf16.mxu0 %vm118_vm0, %v1012_v10  ;;  %v2435_v9 = vld [vmem:[#allocation2 + $0xa1] ss:$8 sps:$4 sm:$0xff]  }
 0x1e8   :  { %2265 = vmatprep.mubr.msk.bf16.mxu1 %vm118_vm0, %v1499_v12  ;;  %2222 = vmatpush3.bf16.msra.mxu0 %v2390_v62  ;;  %v2428_v62 = vld [vmem:[#allocation2 + $0x11] ss:$8 sps:$4 sm:$0xff]   ;;  %v1664_v10 = vpack.c.bf16 %v2436_v8, %v2435_v9 }
 0x1e9   :  { %2264 = vmatpush3.bf16.msra.mxu1 %v2391_v2  ;;  %2245 = vmatprep.subr.bf16.mxu0 %v2392_v11  ;;  %v1661_v1 = vpack.c.bf16 %v2429_v59, %v2428_v62  ;;  %v2432_v2 = vld [vmem:[#allocation2 + $0x51] ss:$8 sps:$4 sm:$0xff]  }
 0x1ea   :  { %2287 = vmatprep.subr.bf16.mxu1 %v2401_v13  ;;  %v1662_v6 = vpack.c.bf16 %v2432_v2, %v2431_v4 }
 0x1ee   :  { %2224 = vmatmul.mubr.msk.bf16.vlgmr.msra.gmra.mxu0 %vm118_vm0, %v1013_v22 }
 0x1ef   :  { %2246 = vmatpush3.bf16.msra.mxu0 %v2392_v11  ;;  %2266 = vmatmul.mubr.msk.bf16.vlgmr.msra.gmra.mxu1 %vm118_vm0, %v1500_v23 }
 0x1f0   :  { %2227 = vmatprep.mubr.msk.bf16.mxu0 %vm118_vm0, %v1014_v26  ;;  %2269 = vmatprep.mubr.msk.bf16.mxu1 %vm118_vm0, %v1501_v27 }
 0x1f1   :  { %2247 = vmatprep.subr.bf16.mxu0 %v2402_v24  ;;  %2288 = vmatpush3.bf16.msra.mxu1 %v2401_v13 }
 0x1f2   :  { %2289 = vmatprep.subr.bf16.mxu1 %v2407_v25 }
 0x1f3   :  { %2248 = vmatpush3.bf16.msra.mxu0 %v2402_v24 }
 0x1f4   :  { %2249 = vmatprep.subr.bf16.mxu0 %v2412_v28 }
 0x1f5   :  { %2290 = vmatpush3.bf16.msra.mxu1 %v2407_v25 }
 0x1f6   :  { %2228 = vmatmul.mubr.msk.bf16.gmra.mxu0 %vm118_vm0, %v1015_v37  ;;  %2291 = vmatprep.subr.bf16.mxu1 %v2413_v33 }
 0x1f7   :  { %2270 = vmatmul.mubr.msk.bf16.gmra.mxu1 %vm118_vm0, %v1502_v39  ;;  %2251 = vmatprep.mubr.msk.bf16.mxu0 %vm118_vm0, %v1336_v40 }
 0x1f8   :  { %2293 = vmatprep.mubr.msk.bf16.mxu1 %vm118_vm0, %v1823_v42  ;;  %2250 = vmatpush3.bf16.msra.mxu0 %v2412_v28 }
 0x1f9   :  { %2292 = vmatpush3.bf16.msra.mxu1 %v2413_v33  ;;  %2273 = vmatprep.subr.bf16.mxu0 %v2414_v41 }
 0x1fe   :  { %2252 = vmatmul.mubr.msk.bf16.vlgmr.msra.gmra.mxu0 %vm118_vm0, %v1337_v49 }
 0x1ff   :  { %2274 = vmatpush3.bf16.msra.mxu0 %v2414_v41  ;;  %2294 = vmatmul.mubr.msk.bf16.vlgmr.msra.gmra.mxu1 %vm118_vm0, %v1824_v52 }
 0x200   :  { %2255 = vmatprep.mubr.msk.bf16.mxu0 %vm118_vm0, %v1338_v54  ;;  %2297 = vmatprep.mubr.msk.bf16.mxu1 %vm118_vm0, %v1825_v55 }
 0x201   :  { %2275 = vmatprep.subr.bf16.mxu0 %v2423_v53 }
 0x203   :  { %2276 = vmatpush3.bf16.msra.mxu0 %v2423_v53 }
 0x204   :  { %2277 = vmatprep.subr.bf16.mxu0 %v2430_v57 }
 0x206   :  { %2256 = vmatmul.mubr.msk.bf16.gmra.mxu0 %vm118_vm0, %v1339_v63 }
 0x207   :  { %2298 = vmatmul.mubr.msk.bf16.gmra.mxu1 %vm118_vm0, %v1826_v0  ;;  %2279 = vmatprep.mubr.msk.bf16.mxu0 %vm118_vm0, %v1661_v1 }
 0x208   :  { %2278 = vmatpush3.bf16.msra.mxu0 %v2430_v57 }
 0x20e   :  { %2280 = vmatmul.mubr.msk.bf16.vlgmr.msra.gmra.mxu0 %vm118_vm0, %v1662_v6 }
 0x20f   :  { %2283 = vmatprep.mubr.msk.bf16.mxu0 %vm118_vm0, %v1663_v7 }
 0x216   :  { %2284 = vmatmul.mubr.msk.bf16.gmra.mxu0 %vm118_vm0, %v1664_v10 }
 0x286   :  { %v2183_v11 = vpop.f32.mrf.mxu0 }
 0x287   :  { %v2211_v12 = vpop.f32.mrf.mxu1 }
 0x288   :  { %v676_v13 = vpop.f32.mrf.mxu0 }
 0x289   :  { %v925_v14 = vpop.f32.mrf.mxu1 }
 0x28a   :  { %v2184_v15 = vpop.f32.mrf.mxu0 }
 0x28b   :  { %v2212_v16 = vpop.f32.mrf.mxu1 }
 0x28c   :  { %v679_v17 = vpop.f32.mrf.mxu0 }
 0x28d   :  { %v928_v18 = vpop.f32.mrf.mxu1 }
 0x296   :  { %v2187_v19 = vpop.f32.mrf.mxu0 }
 0x297   :  { %v2215_v20 = vpop.f32.mrf.mxu1 }
 0x298   :  { %v692_v21 = vpop.f32.mrf.mxu0 }
 0x299   :  { %v2714_v22 = vpop.f32.mrf.mxu1 }
 0x29a   :  { %v2188_v23 = vpop.f32.mrf.mxu0 }
 0x29b   :  { %v2716_v24 = vpop.f32.mrf.mxu1 }
 0x29c   :  { %v695_v25 = vpop.f32.mrf.mxu0 }
 0x29d   :  { %v2718_v26 = vpop.f32.mrf.mxu1 }
 0x29e   :  { %v2197_v27 = vpop.f32.mrf.mxu0 }
 0x29f   :  { %v2239_v28 = vpop.f32.mrf.mxu1  ;;  %v780_v58 = vadd.f32 %v2197_v27, %v2183_v11 }
 0x2a0   :  { %v771_v29 = vpop.f32.mrf.mxu0 }
 0x2a1   :  { %v1249_v30 = vpop.f32.mrf.mxu1  ;;  %v772_v61 = vadd.f32 %v771_v29, %v676_v13  ;;  %v958_v0 = vadd.f32 %v2211_v12, %v780_v58 }
 0x2a2   :  { %v2198_v31 = vpop.f32.mrf.mxu0 }
 0x2a3   :  { %v2240_v32 = vpop.f32.mrf.mxu1  ;;  %v783_v63 = vadd.f32 %v2198_v31, %v2184_v15  ;;  %v956_v5 = vadd.f32 %v925_v14, %v772_v61 }
 0x2a4   :  { %v774_v33 = vpop.f32.mrf.mxu0 }
 0x2a5   :  { %v2720_v35 = vpop.f32.mrf.mxu1  ;;  %v775_v3 = vadd.f32 %v774_v33, %v679_v17  ;;  %v959_v9 = vadd.f32 %v2212_v16, %v783_v63 }
 0x2a6   :  { %v2201_v34 = vpop.f32.mrf.mxu0 }
 0x2a7   :  { %v2722_v36 = vpop.f32.mrf.mxu1  ;;  %v796_v6 = vadd.f32 %v2201_v34, %v2187_v19  ;;  %v957_v27 = vadd.f32 %v928_v18, %v775_v3 }
 0x2a8   :  { %v787_v37 = vpop.f32.mrf.mxu0 }
 0x2a9   :  { %v2724_v38 = vpop.f32.mrf.mxu1  ;;  %v788_v10 = vadd.f32 %v787_v37, %v692_v21  ;;  %v962_v13 = vadd.f32 %v2215_v20, %v796_v6 }
 0x2aa   :  { %v2202_v39 = vpop.f32.mrf.mxu0 }
 0x2ab   :  { %v2726_v40 = vpop.f32.mrf.mxu1  ;;  %v960_v14 = vadd.f32 %v2714_v22, %v788_v10 }
 0x2ac   :  { %v790_v41 = vpop.f32.mrf.mxu0 }
 0x2ad   :  { %v2728_v42 = vpop.f32.mrf.mxu1  ;;  %v791_v58 = vadd.f32 %v790_v41, %v695_v25 }
 0x2ae   :  { %v2225_v43 = vpop.f32.mrf.mxu0 }
 0x2af   :  { %v2267_v44 = vpop.f32.mrf.mxu1  ;;  %v1120_v4 = vadd.f32 %v2225_v43, %v958_v0 }
 0x2b0   :  { %v1087_v45 = vpop.f32.mrf.mxu0 }
 0x2b1   :  { %v1574_v46 = vpop.f32.mrf.mxu1  ;;  %v1118_v8 = vadd.f32 %v1087_v45, %v956_v5 }
 0x2b2   :  { %v2226_v47 = vpop.f32.mrf.mxu0 }
 0x2b3   :  { %v2730_v48 = vpop.f32.mrf.mxu1  ;;  %v1121_v11 = vadd.f32 %v2226_v47, %v959_v9  ;;  %v1280_v31 = vadd.f32 %v1249_v30, %v1118_v8 }
 0x2b4   :  { %v1090_v49 = vpop.f32.mrf.mxu0 }
 0x2b5   :  { %v2732_v50 = vpop.f32.mrf.mxu1  ;;  %v1119_v15 = vadd.f32 %v1090_v49, %v957_v27  ;;  %v1283_v16 = vadd.f32 %v2240_v32, %v1121_v11 }
 0x2b6   :  { %v2229_v51 = vpop.f32.mrf.mxu0 }
 0x2b7   :  { %v2734_v52 = vpop.f32.mrf.mxu1  ;;  %v1124_v17 = vadd.f32 %v2229_v51, %v962_v13 }
 0x2b8   :  { %2778 = vst [vmem:[#allocation9_spill] sm:$0xff] %v2734_v52  ;;  %v1103_v53 = vpop.f32.mrf.mxu0  ;;  %v799_v52 = vadd.f32 %v2202_v39, %v2188_v23  ;;  %v1281_v23 = vadd.f32 %v2720_v35, %v1119_v15  ;;  %v961_v39 = vadd.f32 %v2718_v26, %v791_v58 }
 0x2b9   :  { %v2736_v54 = vpop.f32.mrf.mxu1  ;;  %v1122_v21 = vadd.f32 %v1103_v53, %v960_v14  ;;  %v1286_v25 = vadd.f32 %v2722_v36, %v1124_v17 }
 0x2ba   :  { %2779 = vst [vmem:[#allocation10_spill] sm:$0xff] %v2736_v54  ;;  %v2230_v55 = vpop.f32.mrf.mxu0  ;;  %v963_v37 = vadd.f32 %v2716_v24, %v799_v52  ;;  %v2071_v24 = vld [vmem:[%s2776_s6] ss:$0 sm:$0xff]  ;;  %s2486_s6 = smov [#allocation6]  }
 0x2bb   :  { %v2738_v56 = vpop.f32.mrf.mxu1  ;;  %v1284_v51 = vadd.f32 %v2724_v38, %v1122_v21  ;;  %s1965_s12 = sshll.u32 %s2486_s6, 4  ;;  %s1966_s12 = int_to_ptr.vmem [resolvable:$true] %s1965_s12 }
 0x2bc   :  { %2780 = vst [vmem:[#allocation11_spill] sm:$0xff] %v2738_v56  ;;  %v1106_v57 = vpop.f32.mrf.mxu0  ;;  %s2457_s13 = scalar_lea.vmem %s1966_s12, 1024  ;;  %p2462_p6 = scmp.lt.s32.totalorder %s1966_s12, %s1966_s12 }
 0x2bd   :  { %v2740_v59 = vpop.f32.mrf.mxu1  ;;  %v1123_v49 = vadd.f32 %v1106_v57, %v961_v39  ;;  %p2458_p5 = scmp.ne.s32.totalorder %s1966_s12, %s2457_s13  ;;  %p2463_p7 = scmp.lt.s32.totalorder %s2457_s13, %s2457_s13 }
 0x2be   :  { %2781 = vst [vmem:[#allocation12_spill] sm:$0xff] %v2740_v59  ;;  %v2253_v60 = vpop.f32.mrf.mxu0  ;;  %v1282_v59 = vadd.f32 %v2239_v28, %v1120_v4  ;;  %v1125_v28 = vadd.f32 %v2230_v55, %v963_v37 }
 0x2bf   :  { %v2295_v1 = vpop.f32.mrf.mxu1  ;;  %v1285_v38 = vadd.f32 %v2728_v42, %v1123_v49  ;;  %p2464_p8 = por %p2463_p7, %p2462_p6 }
 0x2c0   :  { %v1411_v62 = vpop.f32.mrf.mxu0  ;;  %v1444_v12 = vadd.f32 %v2253_v60, %v1282_v59  ;;  %v1287_v36 = vadd.f32 %v2726_v40, %v1125_v28 }
 0x2c1   :  { %v1898_v56 = vpop.f32.mrf.mxu1  ;;  %v1442_v34 = vadd.f32 %v1411_v62, %v1280_v31  ;;  %v2782_v62 = vld [vmem:[#allocation9_spill] sm:$0xff]  ;;  %v2783_v40 = vld [vmem:[#allocation10_spill] sm:$0xff]  ;;  %p2465_p9 = pnand %p2464_p8, %p2458_p5 }
 0x2c2   :  { %v2254_v2 = vpop.f32.mrf.mxu0  ;;  %v1607_v20 = vadd.f32 %v2267_v44, %v1444_v12 }
 0x2c3   :  { %v2296_v19 = vpop.f32.mrf.mxu1  ;;  %v1445_v18 = vadd.f32 %v2254_v2, %v1283_v16  ;;  %v1605_v47 = vadd.f32 %v1574_v46, %v1442_v34  ;;  %v2784_v11 = vld [vmem:[#allocation11_spill] sm:$0xff] }
 0x2c4   :  { %v1414_v7 = vpop.f32.mrf.mxu0 }
 0x2c5   :  { %v1901_v30 = vpop.f32.mrf.mxu1  ;;  %v1443_v22 = vadd.f32 %v1414_v7, %v1281_v23  ;;  %v1608_v26 = vadd.f32 %v2730_v48, %v1445_v18  ;;  %v2785_v58 = vld [vmem:[#allocation12_spill] sm:$0xff] }
 0x2c6   :  { %v2257_v54 = vpop.f32.mrf.mxu0 }
 0x2c7   :  { %v1448_v32 = vadd.f32 %v2257_v54, %v1286_v25  ;;  %v2299_v53 = vpop.f32.mrf.mxu1  ;;  %v1606_v54 = vadd.f32 %v2732_v50, %v1443_v22 }
 0x2c8   :  { %v1427_v29 = vpop.f32.mrf.mxu0 }
 0x2c9   :  { %v1446_v55 = vadd.f32 %v1427_v29, %v1284_v51  ;;  %v1611_v63 = vadd.f32 %v2782_v62, %v1448_v32  ;;  %v1914_v3 = vpop.f32.mrf.mxu1 }
 0x2ca   :  { %v2258_v33 = vpop.f32.mrf.mxu0 }
 0x2cb   :  { %v1449_v0 = vadd.f32 %v2258_v33, %v1287_v36  ;;  %v1609_v5 = vadd.f32 %v2783_v40, %v1446_v55  ;;  %v2300_v13 = vpop.f32.mrf.mxu1 }
 0x2cc   :  { %v1430_v43 = vpop.f32.mrf.mxu0 }
 0x2cd   :  { %v1447_v6 = vadd.f32 %v1430_v43, %v1285_v38  ;;  %v1612_v27 = vadd.f32 %v2784_v11, %v1449_v0  ;;  %v1917_v16 = vpop.f32.mrf.mxu1 }
 0x2ce   :  { %v2281_v41 = vpop.f32.mrf.mxu0 }
 0x2cf   :  { %v1769_v45 = vadd.f32 %v2281_v41, %v1607_v20  ;;  %v1610_v17 = vadd.f32 %v2785_v58, %v1447_v6 }
 0x2d0   :  { %v1736_v35 = vpop.f32.mrf.mxu0 }
 0x2d1   :  { %v1931_v44 = vadd.f32 %v2295_v1, %v1769_v45  ;;  %v1767_v52 = vadd.f32 %v1736_v35, %v1605_v47 }
 0x2d2   :  { %v2282_v59 = vpop.f32.mrf.mxu0 }
 0x2d3   :  { %v1946_v60 = vadd.f32 %v2071_v24, %v1931_v44  ;;  %v1929_v46 = vadd.f32 %v1898_v56, %v1767_v52  ;;  %v1770_v57 = vadd.f32 %v2282_v59, %v1608_v26 }
 0x2d4   :  { %v1739_v61 = vpop.f32.mrf.mxu0 }
 0x2d5   :  { %1954 = vst.msk [vmem:[#allocation6 + $0x10] sm:$0xff] %vm118_vm0, %v1946_v60  ;;  %v1944_v1 = vadd.f32 %v2071_v24, %v1929_v46  ;;  %v1932_v48 = vadd.f32 %v2296_v19, %v1770_v57  ;;  %v1768_v2 = vadd.f32 %v1739_v61, %v1606_v54 }
 0x2d6   :  { %v2285_v4 = vpop.f32.mrf.mxu0 }
 0x2d7   :  { %1952 = vst.msk [vmem:[#allocation6] sm:$0xff] %vm118_vm0, %v1944_v1  ;;  %v1947_v56 = vadd.f32 %v2071_v24, %v1932_v48  ;;  %v1930_v50 = vadd.f32 %v1901_v30, %v1768_v2  ;;  %v1773_v7 = vadd.f32 %v2285_v4, %v1611_v63 }
 0x2d8   :  { %v1752_v42 = vpop.f32.mrf.mxu0 }
 0x2d9   :  { %1955 = vst.msk [vmem:[#allocation6 + $0x18] sm:$0xff] %vm118_vm0, %v1947_v56  ;;  %v1945_v8 = vadd.f32 %v2071_v24, %v1930_v50  ;;  %v1935_v9 = vadd.f32 %v2299_v53, %v1773_v7  ;;  %v1771_v10 = vadd.f32 %v1752_v42, %v1609_v5 }
 0x2da   :  { %v2286_v29 = vpop.f32.mrf.mxu0 }
 0x2db   :  { %1953 = vst.msk [vmem:[#allocation6 + $0x8] sm:$0xff] %vm118_vm0, %v1945_v8  ;;  %v1950_v15 = vadd.f32 %v2071_v24, %v1935_v9  ;;  %v1933_v12 = vadd.f32 %v1914_v3, %v1771_v10  ;;  %v1774_v31 = vadd.f32 %v2286_v29, %v1612_v27 }
 0x2dc   :  { %v1755_v14 = vpop.f32.mrf.mxu0 }
 0x2dd   :  { %1958 = vst.msk [vmem:[#allocation6 + $0x30] sm:$0xff] %vm118_vm0, %v1950_v15  ;;  %v1948_v19 = vadd.f32 %v2071_v24, %v1933_v12  ;;  %v1936_v33 = vadd.f32 %v2300_v13, %v1774_v31  ;;  %v1772_v34 = vadd.f32 %v1755_v14, %v1610_v17 }
 0x2df   :  { %1956 = vst.msk [vmem:[#allocation6 + $0x20] sm:$0xff] %vm118_vm0, %v1948_v19  ;;  %v1951_v21 = vadd.f32 %v2071_v24, %v1936_v33  ;;  %v1934_v37 = vadd.f32 %v1917_v16, %v1772_v34 }
 0x2e1   :  { %1959 = vst.msk [vmem:[#allocation6 + $0x38] sm:$0xff] %vm118_vm0, %v1951_v21  ;;  %v1949_v43 = vadd.f32 %v2071_v24, %v1934_v37 }
 0x2e3   :  { %1957 = vst.msk [vmem:[#allocation6 + $0x28] sm:$0xff] %vm118_vm0, %v1949_v43 }
 0x2e4   :  { %2468 = shalt.err (!%p2465_p9)
}
 0x2e5   :  { %s2487_s14 = smov 128   ;;  %s2488_s5 = smov 8  }
 0x2e6   :  { %1971 = dma.vmem_to_hbm [thread:$0]  %s1966_s12, 1024, %s2777_s7, [#allocation5], %s2487_s14, %s2487_s14, %s2488_s5  }
 0x2e7   :  { %2479 = dma.done.wait [#allocation5], 1024  }
 0x2e8   :  { %2480 = vsyncadd [#allocation5], 4294966272 }
 0x2e9   :  { %1975 = vsyncpa [#allocation4], 1 }
 0x2ea   :  { %1976 = vsyncpa [#allocation5], 1 }

</bundles_post_ra>
